<compile_context>
chip_gen: v7x
topology: tpu7x:2x2x1
jax: 0.10.0
libtpu: 0.0.40
codegen_flags: <defaults>
</compile_context>

<pallas_src>
import functools

import numpy as np
import jax
import jax.numpy as jnp
from jax import lax
from jax.experimental import pallas as pl
from jax.experimental.pallas import tpu as pltpu


# ----------------------------------------------------------------------------
# Fused per-timestep kernel (runs once per grid step t)
# ----------------------------------------------------------------------------
def _vgrnn_kernel(*refs, n_layer, h_dim, z_dim, slab_w):
    # refs[0] is the scalar-prefetch t->adjacency-slot table (used only by the
    # A index_map, not needed in the body).
    (a_ref, phix_ref, eps_ref, mask_ref, h0_ref,
     enc_wx, enc_wh, enc_head_w,
     prior_w, prior_b, prior_mu_w, prior_mu_b,
     phi_z_w, phi_z_b) = refs[1:15]
    lstm_wx = refs[15:15 + n_layer]                     # (d_in, 4h) per layer
    lstm_wh = refs[15 + n_layer:15 + 2 * n_layer]       # (h, 4h) per layer
    mu_out, dec_out, h_out = refs[15 + 2 * n_layer:18 + 2 * n_layer]
    c_scr = refs[18 + 2 * n_layer]                      # VMEM scratch: cell state

    t = pl.program_id(0)
    bf16 = jnp.bfloat16

    def mm(lhs, rhs):                                   # bf16 in, f32 accumulate
        return jnp.dot(lhs, rhs, preferred_element_type=jnp.float32)

    # Initialize recurrent state on the first grid step (h_out is a
    # grid-resident output block; c lives in scratch).  The reference seeds
    # both h and c from hidden_in (zeros when hidden_in is None).
    @pl.when(t == 0)
    def _():
        h_out[...] = h0_ref[...]
        c_scr[...] = h0_ref[...]

    a = a_ref[0]                      # (N, N) bf16 dense normalized adjacency
    phi_x_t = phix_ref[0]             # (N, h) bf16, relu(xW+b) hoisted to wrapper
    eps = eps_ref[0]                  # (N, z) f32

    h_top = h_out[n_layer - 1]        # previous top-layer hidden state (N, h) f32
    h_top_bf = h_top.astype(bf16)

    # encoder GCN: relu(A @ (cat([phi_x, h_top]) @ W_enc))
    #            = relu(A @ (phi_x @ Wx + h_top @ Wh))   (no lane concat)
    enc_pre = mm(phi_x_t, enc_wx[...]) + mm(h_top_bf, enc_wh[...])
    enc_t = jnp.maximum(mm(a, enc_pre.astype(bf16)), 0.0)

    # merged mu/logvar GCN head: A @ (enc_t @ [W_mu | W_logvar])  -> (N, 2z)
    enc_heads = mm(a, mm(enc_t.astype(bf16), enc_head_w[...]).astype(bf16))
    enc_mu = enc_heads[:, :z_dim]
    enc_logvar = jax.nn.softplus(enc_heads[:, z_dim:])

    # prior: relu(h_top @ W + b); only the mu head is live in the outputs.
    prior_t = jnp.maximum(mm(h_top_bf, prior_w[...]) + prior_b[...], 0.0)
    prior_mu = mm(prior_t.astype(bf16), prior_mu_w[...]) + prior_mu_b[...]

    # reparameterization exactly as the reference: z = eps * logvar + mu
    z_t = eps * enc_logvar + enc_mu

    # phi_z: ReLU(z @ W + b)
    phi_z_t = jnp.maximum(mm(z_t.astype(bf16), phi_z_w[...]) + phi_z_b[...], 0.0)
    phi_z_bf = phi_z_t.astype(bf16)

    # inner-product decoder: only the final timestep's dec_t is returned by
    # the reference forward, so compute/store it only at t == T-1.
    @pl.when(t == pl.num_programs(0) - 1)
    def _():
        z_drop = (z_t * mask_ref[...]).astype(bf16)     # dropout (1/keep folded)
        dec_out[...] = lax.dot_general(
            z_drop, z_drop, (((1,), (1,)), ((), ())),
            preferred_element_type=jnp.float32)          # (N, N)

    # graph-LSTM: the 8 GCNs per layer are fused into A @ (x @ Wx + h @ Wh)
    inp_bf = None
    for i in range(n_layer):
        h_i = h_out[i]                # old h[i] (read before write)
        c_i = c_scr[i]                # old c[i]
        h_i_bf = h_i.astype(bf16)
        if i == 0:
            wx0 = lstm_wx[0][...]                          # (2h, 4h) bf16
            x_part = mm(phi_x_t, wx0[:h_dim]) + mm(phi_z_bf, wx0[h_dim:])
        else:
            x_part = mm(inp_bf, lstm_wx[i][...])
        gates_pre = x_part + mm(h_i_bf, lstm_wh[i][...])   # (N, 4h) f32
        gates = mm(a, gates_pre.astype(bf16))              # (N, 4h) f32
        # one sigmoid over the 3h (i,f,o) lanes + one tanh over the c~ lanes
        sig = jax.nn.sigmoid(gates[:, :3 * h_dim])
        i_g = sig[:, :h_dim]
        f_g = sig[:, h_dim:2 * h_dim]
        o_g = sig[:, 2 * h_dim:]
        c_tilde = jnp.tanh(gates[:, 3 * h_dim:])
        # reference quirks kept: c_out = F*h_prev + I*c~ ; h_out = O*tanh(c_prev)
        c_new = f_g * h_i + i_g * c_tilde
        h_new = o_g * jnp.tanh(c_i)
        h_out[i] = h_new
        c_scr[i] = c_new
        inp_bf = h_new.astype(bf16)   # layer i>0 consumes new h of layer i-1

    # lane-dense small-output slab:
    #   [enc_mu | enc_logvar_raw | prior_mu | zero-pad]  (width slab_w >= 128)
    pad_w = slab_w - 3 * z_dim
    pieces = [enc_heads, prior_mu]
    if pad_w > 0:
        pieces.append(jnp.zeros((enc_heads.shape[0], pad_w), jnp.float32))
    mu_out[0] = jnp.concatenate(pieces, axis=1)


# ----------------------------------------------------------------------------
# Graph preprocessing + parameters (plain-JAX glue)
# ----------------------------------------------------------------------------
def build_norm_adj(edge_idx, num_nodes):
    """Dense symmetric-normalized adjacency with self-loops (GCNConv.forward)."""
    src = edge_idx[0]
    dst = edge_idx[1]
    loops = jnp.arange(num_nodes, dtype=edge_idx.dtype)
    row = jnp.concatenate([src, loops])
    col = jnp.concatenate([dst, loops])
    w = jnp.ones((row.shape[0],), jnp.float32)
    deg = jnp.zeros((num_nodes,), jnp.float32).at[row].add(w)
    deg_inv = jnp.where(deg > 0, deg ** -0.5, 0.0)
    norm = deg_inv[row] * w * deg_inv[col]
    # out[i] = sum over edges (j -> i) of norm * x[j]
    a = jnp.zeros((num_nodes, num_nodes), jnp.float32).at[col, row].add(norm)
    return a


def _glorot(key, shape):
    a = (6.0 / (shape[0] + shape[1])) ** 0.5
    return jax.random.uniform(key, shape, jnp.float32, -a, a)


def _lin_init(key, d_in, d_out):
    kw, kb = jax.random.split(key)
    bound = 1.0 / (d_in ** 0.5)
    w = jax.random.uniform(kw, (d_in, d_out), jnp.float32, -bound, bound)
    b = jax.random.uniform(kb, (d_out,), jnp.float32, -bound, bound)
    return w, b


def init_params(key, x_dim, h_dim, z_dim, n_layer):
    keys = jax.random.split(key, 8 + 8 * n_layer)
    bf16 = jnp.bfloat16

    phi_x_w, phi_x_b = _lin_init(keys[0], x_dim, h_dim)
    phi_z_w, phi_z_b = _lin_init(keys[1], z_dim, h_dim)
    enc_w = _glorot(keys[2], (2 * h_dim, h_dim))
    enc_mu_w = _glorot(keys[3], (h_dim, z_dim))
    enc_logvar_w = _glorot(keys[4], (h_dim, z_dim))
    prior_w, prior_b = _lin_init(keys[5], h_dim, h_dim)
    prior_mu_w, prior_mu_b = _lin_init(keys[6], h_dim, z_dim)
    # prior_logvar head of the reference is dead in its returned values.

    # graph-LSTM weights, per layer fused across the 4 gates and split into
    # the x-part (d_in, 4h) and h-part (h, 4h) so the kernel never concats.
    lstm_wx, lstm_wh = [], []
    kidx = 8
    for i in range(n_layer):
        d_in = 2 * h_dim if i == 0 else h_dim
        x_ws = [_glorot(keys[kidx + j], (d_in, h_dim)) for j in range(4)]
        h_ws = [_glorot(keys[kidx + 4 + j], (h_dim, h_dim)) for j in range(4)]
        kidx += 8
        lstm_wx.append(jnp.concatenate(x_ws, axis=1).astype(bf16))
        lstm_wh.append(jnp.concatenate(h_ws, axis=1).astype(bf16))

    return {
        "n_layer": n_layer, "h_dim": h_dim, "z_dim": z_dim,
        # phi_x is hoisted out of the serial kernel (state independent).
        "phi_x_w": phi_x_w, "phi_x_b": phi_x_b,
        "kernel": {
            "enc_wx": enc_w[:h_dim].astype(bf16),
            "enc_wh": enc_w[h_dim:].astype(bf16),
            "enc_head_w": jnp.concatenate([enc_mu_w, enc_logvar_w], 1).astype(bf16),
            "prior_w": prior_w.astype(bf16),
            "prior_b": prior_b.reshape(1, -1),                 # f32 bias
            "prior_mu_w": prior_mu_w.astype(bf16),
            "prior_mu_b": prior_mu_b.reshape(1, -1),           # f32 bias
            "phi_z_w": phi_z_w.astype(bf16),
            "phi_z_b": phi_z_b.reshape(1, -1),                 # f32 bias
            "lstm_wx": lstm_wx, "lstm_wh": lstm_wh,
        },
    }


# ----------------------------------------------------------------------------
# Helpers: BlockSpecs and VMEM budget
# ----------------------------------------------------------------------------
def _const_spec(shape):
    nd = len(shape)
    return pl.BlockSpec(shape, lambda *_, _nd=nd: (0,) * _nd)


def _round_up(v, m):
    return (v + m - 1) // m * m


def _blk_bytes(shape, dtype):
    """Tile-padded VMEM footprint of one block (last dim -> 128, 2nd-last -> 8)."""
    s = list(shape)
    s[-1] = _round_up(s[-1], 128)
    if len(s) >= 2:
        s[-2] = _round_up(s[-2], 8)
    n = 1
    for d in s:
        n *= d
    return n * jnp.dtype(dtype).itemsize


# ----------------------------------------------------------------------------
# Full forward: one pallas_call over the time grid
# ----------------------------------------------------------------------------
def vgrnn_forward(params, x, edge_idx_list, key, hidden_in=None):
    """Returns (all_enc_mu, all_prior_mu, h, dec_t) like VGRNN.forward."""
    T, n_nodes, _ = x.shape
    n_layer, h_dim, z_dim = params["n_layer"], params["h_dim"], params["z_dim"]
    slab_w = _round_up(3 * z_dim, 128)      # lane-dense per-step output slab

    # --- de-duplicate adjacencies: identical topologies are DMA'd once ------
    uniq, slots = [], []
    for e in edge_idx_list:
        e_np = np.asarray(e)
        hit = None
        for k, u in enumerate(uniq):
            if u.shape == e_np.shape and np.array_equal(u, e_np):
                hit = k
                break
        if hit is None:
            uniq.append(e_np)
            hit = len(uniq) - 1
        slots.append(hit)
    slot_tbl = jnp.asarray(slots, jnp.int32)                        # (T,)
    a_uniq = jnp.stack([build_norm_adj(jnp.asarray(u), n_nodes)
                        for u in uniq]).astype(jnp.bfloat16)        # (U, N, N)

    # --- hoisted phi_x (state independent, one big matmul for all T) --------
    phi_x_all = jax.nn.relu(
        jnp.einsum("tnx,xh->tnh", x, params["phi_x_w"]) + params["phi_x_b"]
    ).astype(jnp.bfloat16)                                          # (T, N, h)

    # --- RNG draws ------------------------------------------------------------
    k_eps, k_drop = jax.random.split(key)
    eps_all = jax.random.normal(k_eps, (T, n_nodes, z_dim), jnp.float32)
    # decoder dropout p=0.5 with 1/keep_prob folded in; the reference decoder
    # runs in training mode and only the last-step decoder is materialized.
    mask_last = jax.random.bernoulli(
        k_drop, 0.5, (n_nodes, z_dim)).astype(jnp.float32) * 2.0

    if hidden_in is None:
        h0 = jnp.zeros((n_layer, n_nodes, h_dim), jnp.float32)
    else:
        h0 = hidden_in.astype(jnp.float32)     # kernel also seeds c from h0

    kp = params["kernel"]
    inputs = [a_uniq, phi_x_all, eps_all, mask_last, h0,
              kp["enc_wx"], kp["enc_wh"], kp["enc_head_w"],
              kp["prior_w"], kp["prior_b"], kp["prior_mu_w"], kp["prior_mu_b"],
              kp["phi_z_w"], kp["phi_z_b"]] \
        + list(kp["lstm_wx"]) + list(kp["lstm_wh"])

    in_specs = [
        pl.BlockSpec((1, n_nodes, n_nodes), lambda t, s: (s[t], 0, 0)),  # A[slot[t]]
        pl.BlockSpec((1, n_nodes, h_dim), lambda t, s: (t, 0, 0)),       # phi_x[t]
        pl.BlockSpec((1, n_nodes, z_dim), lambda t, s: (t, 0, 0)),       # eps[t]
        _const_spec((n_nodes, z_dim)),                                   # drop mask
        _const_spec((n_layer, n_nodes, h_dim)),                          # h0
    ] + [_const_spec(tuple(w.shape)) for w in inputs[5:]]                # weights

    out_shape = (
        jax.ShapeDtypeStruct((T, n_nodes, slab_w), jnp.float32),   # mu slab
        jax.ShapeDtypeStruct((n_nodes, n_nodes), jnp.float32),     # dec_t (last step)
        jax.ShapeDtypeStruct((n_layer, n_nodes, h_dim), jnp.float32),  # final h
    )
    out_specs = (
        pl.BlockSpec((1, n_nodes, slab_w), lambda t, s: (t, 0, 0)),
        _const_spec((n_nodes, n_nodes)),                # resident, written at t==T-1
        _const_spec((n_layer, n_nodes, h_dim)),         # resident carry + final h
    )

    # --- explicit VMEM budget (conservative: every block 2x-buffered) -------
    blk_bytes = [
        _blk_bytes((1, n_nodes, n_nodes), jnp.bfloat16),
        _blk_bytes((1, n_nodes, h_dim), jnp.bfloat16),
        _blk_bytes((1, n_nodes, z_dim), jnp.float32),
        _blk_bytes((n_nodes, z_dim), jnp.float32),
        _blk_bytes((n_layer, n_nodes, h_dim), jnp.float32),
    ] + [_blk_bytes(w.shape, w.dtype) for w in inputs[5:]] + [
        _blk_bytes((1, n_nodes, slab_w), jnp.float32),
        _blk_bytes((n_nodes, n_nodes), jnp.float32),
        _blk_bytes((n_layer, n_nodes, h_dim), jnp.float32),
    ]
    scratch_bytes = _blk_bytes((n_layer, n_nodes, h_dim), jnp.float32)
    total = 2 * sum(blk_bytes) + scratch_bytes
    # raise the scoped default (16/32 MiB) but stay under v7x's 64 MiB VMEM
    vmem_limit = int(min(56 * 1024 * 1024, max(8 * 1024 * 1024, 2 * total)))

    mu_slab, dec_last, h_final = pl.pallas_call(
        functools.partial(_vgrnn_kernel, n_layer=n_layer, h_dim=h_dim,
                          z_dim=z_dim, slab_w=slab_w),
        out_shape=out_shape,
        grid_spec=pltpu.PrefetchScalarGridSpec(
            num_scalar_prefetch=1,          # t -> adjacency slot table
            grid=(T,),
            in_specs=in_specs,
            out_specs=out_specs,
            scratch_shapes=[pltpu.VMEM((n_layer, n_nodes, h_dim), jnp.float32)]),
        compiler_params=pltpu.CompilerParams(
            dimension_semantics=("arbitrary",),
            vmem_limit_bytes=vmem_limit),
    )(slot_tbl, *inputs)

    all_enc_mu = [mu_slab[t, :, :z_dim] for t in range(T)]
    all_prior_mu = [mu_slab[t, :, 2 * z_dim:3 * z_dim] for t in range(T)]
    return all_enc_mu, all_prior_mu, h_final, dec_last


# ----------------------------------------------------------------------------
# Main
# ----------------------------------------------------------------------------
if __name__ == "__main__":
    T, N = 3, 16          # time steps, nodes
    X_DIM, H_DIM, Z_DIM = 8, 16, 8
    N_LAYER = 1

    root = jax.random.PRNGKey(0)
    k_param, k_x, k_fwd = jax.random.split(root, 3)

    params = init_params(k_param, X_DIM, H_DIM, Z_DIM, N_LAYER)
    x = jax.random.normal(k_x, (T, N, X_DIM), jnp.float32)

    # undirected ring graph, same topology every time step (adjacency is
    # de-duplicated to a single DMA'd block inside vgrnn_forward)
    s = jnp.arange(N, dtype=jnp.int32)
    d = (s + 1) % N
    edge_idx = jnp.stack([jnp.concatenate([s, d]), jnp.concatenate([d, s])])
    edge_idx_list = [edge_idx for _ in range(T)]

    all_enc_mu, all_prior_mu, h, dec_t = vgrnn_forward(
        params, x, edge_idx_list, k_fwd)

    jax.block_until_ready(h)
    jax.block_until_ready(dec_t)
    jax.block_until_ready(all_enc_mu[-1])
    jax.block_until_ready(all_prior_mu[-1])

    assert h.shape == (N_LAYER, N, H_DIM)
    assert dec_t.shape == (N, N)
    assert all(m.shape == (N, Z_DIM) for m in all_enc_mu)
    assert all(m.shape == (N, Z_DIM) for m in all_prior_mu)
    print("KERNEL_OK")
</pallas_src>

<mosaic_0001>
module attributes {stable_mosaic.version = 11 : i64} {
  func.func @_vgrnn_kernel(%arg0: i32, %arg1: memref<3xi32, #tpu.memory_space<smem>>, %arg2: memref<1x16x16xbf16, #tpu.memory_space<vmem>>, %arg3: memref<1x16x16xbf16, #tpu.memory_space<vmem>>, %arg4: memref<1x16x8xf32, #tpu.memory_space<vmem>>, %arg5: memref<16x8xf32, #tpu.memory_space<vmem>>, %arg6: memref<1x16x16xf32, #tpu.memory_space<vmem>>, %arg7: memref<16x16xbf16, #tpu.memory_space<vmem>>, %arg8: memref<16x16xbf16, #tpu.memory_space<vmem>>, %arg9: memref<16x16xbf16, #tpu.memory_space<vmem>>, %arg10: memref<16x16xbf16, #tpu.memory_space<vmem>>, %arg11: memref<1x16xf32, #tpu.memory_space<vmem>>, %arg12: memref<16x8xbf16, #tpu.memory_space<vmem>>, %arg13: memref<1x8xf32, #tpu.memory_space<vmem>>, %arg14: memref<8x16xbf16, #tpu.memory_space<vmem>>, %arg15: memref<1x16xf32, #tpu.memory_space<vmem>>, %arg16: memref<32x64xbf16, #tpu.memory_space<vmem>>, %arg17: memref<16x64xbf16, #tpu.memory_space<vmem>>, %arg18: memref<1x16x128xf32, #tpu.memory_space<vmem>>, %arg19: memref<16x16xf32, #tpu.memory_space<vmem>>, %arg20: memref<1x16x16xf32, #tpu.memory_space<vmem>>, %arg21: memref<1x16x16xf32, #tpu.memory_space<vmem>>) attributes {dimension_semantics = [#tpu.dimension_semantics<arbitrary>], iteration_bounds = array<i64: 3>, scalar_prefetch = 1 : i64, scratch_operands = 1 : i64, tpu.core_type = #tpu.core_type<tc>, window_params = [{transform_indices = @transform_0, window_bounds = array<i64: 1, 16, 16>}, {transform_indices = @transform_1, window_bounds = array<i64: 1, 16, 16>}, {transform_indices = @transform_2, window_bounds = array<i64: 1, 16, 8>}, {pipeline_mode = #tpu.pipeline_mode<synchronous>, transform_indices = @transform_3, window_bounds = array<i64: 16, 8>}, {pipeline_mode = #tpu.pipeline_mode<synchronous>, transform_indices = @transform_4, window_bounds = array<i64: 1, 16, 16>}, {pipeline_mode = #tpu.pipeline_mode<synchronous>, transform_indices = @transform_5, window_bounds = array<i64: 16, 16>}, {pipeline_mode = #tpu.pipeline_mode<synchronous>, transform_indices = @transform_6, window_bounds = array<i64: 16, 16>}, {pipeline_mode = #tpu.pipeline_mode<synchronous>, transform_indices = @transform_7, window_bounds = array<i64: 16, 16>}, {pipeline_mode = #tpu.pipeline_mode<synchronous>, transform_indices = @transform_8, window_bounds = array<i64: 16, 16>}, {pipeline_mode = #tpu.pipeline_mode<synchronous>, transform_indices = @transform_9, window_bounds = array<i64: 1, 16>}, {pipeline_mode = #tpu.pipeline_mode<synchronous>, transform_indices = @transform_10, window_bounds = array<i64: 16, 8>}, {pipeline_mode = #tpu.pipeline_mode<synchronous>, transform_indices = @transform_11, window_bounds = array<i64: 1, 8>}, {pipeline_mode = #tpu.pipeline_mode<synchronous>, transform_indices = @transform_12, window_bounds = array<i64: 8, 16>}, {pipeline_mode = #tpu.pipeline_mode<synchronous>, transform_indices = @transform_13, window_bounds = array<i64: 1, 16>}, {pipeline_mode = #tpu.pipeline_mode<synchronous>, transform_indices = @transform_14, window_bounds = array<i64: 32, 64>}, {pipeline_mode = #tpu.pipeline_mode<synchronous>, transform_indices = @transform_15, window_bounds = array<i64: 16, 64>}, {transform_indices = @transform_16, window_bounds = array<i64: 1, 16, 128>}, {pipeline_mode = #tpu.pipeline_mode<synchronous>, transform_indices = @transform_17, window_bounds = array<i64: 16, 16>}, {pipeline_mode = #tpu.pipeline_mode<synchronous>, transform_indices = @transform_18, window_bounds = array<i64: 1, 16, 16>}]} {
    %c0_i32 = arith.constant 0 : i32
    %0 = arith.cmpi eq, %arg0, %c0_i32 : i32
    %1 = arith.extui %0 : i1 to i32
    %c0_i32_0 = arith.constant 0 : i32
    %2 = arith.cmpi ne, %1, %c0_i32_0 : i32
    scf.if %2 {
      %c0_68 = arith.constant 0 : index
      %c0_69 = arith.constant 0 : index
      %c0_70 = arith.constant 0 : index
      %112 = vector.load %arg6[%c0_68, %c0_69, %c0_70] : memref<1x16x16xf32, #tpu.memory_space<vmem>>, vector<1x16x16xf32>
      %c0_71 = arith.constant 0 : index
      %c0_72 = arith.constant 0 : index
      %c0_73 = arith.constant 0 : index
      %113 = vector.load %arg20[%c0_71, %c0_72, %c0_73] : memref<1x16x16xf32, #tpu.memory_space<vmem>>, vector<1x16x16xf32>
      tpu.vector_store %arg20[%c0_71, %c0_72, %c0_73], %112 {strides = array<i32>} : memref<1x16x16xf32, #tpu.memory_space<vmem>>, vector<1x16x16xf32>,
      %c0_74 = arith.constant 0 : index
      %c0_75 = arith.constant 0 : index
      %c0_76 = arith.constant 0 : index
      %114 = vector.load %arg6[%c0_74, %c0_75, %c0_76] : memref<1x16x16xf32, #tpu.memory_space<vmem>>, vector<1x16x16xf32>
      %c0_77 = arith.constant 0 : index
      %c0_78 = arith.constant 0 : index
      %c0_79 = arith.constant 0 : index
      %115 = vector.load %arg21[%c0_77, %c0_78, %c0_79] : memref<1x16x16xf32, #tpu.memory_space<vmem>>, vector<1x16x16xf32>
      tpu.vector_store %arg21[%c0_77, %c0_78, %c0_79], %114 {strides = array<i32>} : memref<1x16x16xf32, #tpu.memory_space<vmem>>, vector<1x16x16xf32>,
    } else {
    }
    %c0 = arith.constant 0 : index
    %c0_1 = arith.constant 0 : index
    %c0_2 = arith.constant 0 : index
    %3 = vector.load %arg2[%c0, %c0_1, %c0_2] : memref<1x16x16xbf16, #tpu.memory_space<vmem>>, vector<1x16x16xbf16>
    %4 = vector.shape_cast %3 : vector<1x16x16xbf16> to vector<16x16xbf16>
    %c0_3 = arith.constant 0 : index
    %c0_4 = arith.constant 0 : index
    %c0_5 = arith.constant 0 : index
    %5 = vector.load %arg3[%c0_3, %c0_4, %c0_5] : memref<1x16x16xbf16, #tpu.memory_space<vmem>>, vector<1x16x16xbf16>
    %6 = vector.shape_cast %5 : vector<1x16x16xbf16> to vector<16x16xbf16>
    %c0_6 = arith.constant 0 : index
    %c0_7 = arith.constant 0 : index
    %c0_8 = arith.constant 0 : index
    %7 = vector.load %arg4[%c0_6, %c0_7, %c0_8] : memref<1x16x8xf32, #tpu.memory_space<vmem>>, vector<1x16x8xf32>
    %8 = vector.shape_cast %7 : vector<1x16x8xf32> to vector<16x8xf32>
    %c0_9 = arith.constant 0 : index
    %c0_10 = arith.constant 0 : index
    %c0_11 = arith.constant 0 : index
    %9 = vector.load %arg20[%c0_9, %c0_10, %c0_11] : memref<1x16x16xf32, #tpu.memory_space<vmem>>, vector<1x16x16xf32>
    %10 = vector.shape_cast %9 : vector<1x16x16xf32> to vector<16x16xf32>
    %11 = arith.truncf %10 : vector<16x16xf32> to vector<16x16xbf16>
    %c0_12 = arith.constant 0 : index
    %c0_13 = arith.constant 0 : index
    %12 = vector.load %arg7[%c0_12, %c0_13] : memref<16x16xbf16, #tpu.memory_space<vmem>>, vector<16x16xbf16>
    %cst = arith.constant dense<0.000000e+00> : vector<16x16xf32>
    %13 = tpu.matmul %6, %12, %cst {dimension_numbers = #tpu.dot_dimension_numbers<[1], [0], [0], [1], [0, 0, 1, 1], [], []>} : vector<16x16xbf16>, vector<16x16xbf16>, vector<16x16xf32> -> vector<16x16xf32>
    %c0_14 = arith.constant 0 : index
    %c0_15 = arith.constant 0 : index
    %14 = vector.load %arg8[%c0_14, %c0_15] : memref<16x16xbf16, #tpu.memory_space<vmem>>, vector<16x16xbf16>
    %cst_16 = arith.constant dense<0.000000e+00> : vector<16x16xf32>
    %15 = tpu.matmul %11, %14, %cst_16 {dimension_numbers = #tpu.dot_dimension_numbers<[1], [0], [0], [1], [0, 0, 1, 1], [], []>} : vector<16x16xbf16>, vector<16x16xbf16>, vector<16x16xf32> -> vector<16x16xf32>
    %16 = arith.addf %13, %15 : vector<16x16xf32>
    %17 = arith.truncf %16 : vector<16x16xf32> to vector<16x16xbf16>
    %cst_17 = arith.constant dense<0.000000e+00> : vector<16x16xf32>
    %18 = tpu.matmul %4, %17, %cst_17 {dimension_numbers = #tpu.dot_dimension_numbers<[1], [0], [0], [1], [0, 0, 1, 1], [], []>} : vector<16x16xbf16>, vector<16x16xbf16>, vector<16x16xf32> -> vector<16x16xf32>
    %cst_18 = arith.constant 0.000000e+00 : f32
    %19 = vector.broadcast %cst_18 : f32 to vector<16x16xf32>
    %20 = arith.maximumf %18, %19 : vector<16x16xf32>
    %21 = arith.truncf %20 : vector<16x16xf32> to vector<16x16xbf16>
    %c0_19 = arith.constant 0 : index
    %c0_20 = arith.constant 0 : index
    %22 = vector.load %arg9[%c0_19, %c0_20] : memref<16x16xbf16, #tpu.memory_space<vmem>>, vector<16x16xbf16>
    %cst_21 = arith.constant dense<0.000000e+00> : vector<16x16xf32>
    %23 = tpu.matmul %21, %22, %cst_21 {dimension_numbers = #tpu.dot_dimension_numbers<[1], [0], [0], [1], [0, 0, 1, 1], [], []>} : vector<16x16xbf16>, vector<16x16xbf16>, vector<16x16xf32> -> vector<16x16xf32>
    %24 = arith.truncf %23 : vector<16x16xf32> to vector<16x16xbf16>
    %cst_22 = arith.constant dense<0.000000e+00> : vector<16x16xf32>
    %25 = tpu.matmul %4, %24, %cst_22 {dimension_numbers = #tpu.dot_dimension_numbers<[1], [0], [0], [1], [0, 0, 1, 1], [], []>} : vector<16x16xbf16>, vector<16x16xbf16>, vector<16x16xf32> -> vector<16x16xf32>
    %26 = vector.extract_strided_slice %25 {offsets = [0, 0], sizes = [16, 8], strides = [1, 1]} : vector<16x16xf32> to vector<16x8xf32>
    %27 = vector.extract_strided_slice %25 {offsets = [0, 8], sizes = [16, 8], strides = [1, 1]} : vector<16x16xf32> to vector<16x8xf32>
    %cst_23 = arith.constant 0.000000e+00 : f32
    %28 = vector.broadcast %cst_23 : f32 to vector<16x8xf32>
    %29 = arith.maximumf %27, %28 : vector<16x8xf32>
    %30 = vector.broadcast %cst_23 : f32 to vector<16x8xf32>
    %31 = arith.subf %27, %30 : vector<16x8xf32>
    %32 = arith.cmpf one, %31, %31 : vector<16x8xf32>
    %33 = vector.broadcast %cst_23 : f32 to vector<16x8xf32>
    %34 = arith.addf %27, %33 : vector<16x8xf32>
    %35 = math.absf %31 : vector<16x8xf32>
    %cst_24 = arith.constant 0.000000e+00 : f32
    %36 = vector.broadcast %cst_24 : f32 to vector<16x8xf32>
    %37 = arith.subf %36, %35 : vector<16x8xf32>
    %38 = math.exp %37 : vector<16x8xf32>
    %39 = math.log1p %38 : vector<16x8xf32>
    %40 = arith.addf %29, %39 : vector<16x8xf32>
    %41 = arith.select %32, %34, %40 : vector<16x8xi1>, vector<16x8xf32>
    %c0_25 = arith.constant 0 : index
    %c0_26 = arith.constant 0 : index
    %42 = vector.load %arg10[%c0_25, %c0_26] : memref<16x16xbf16, #tpu.memory_space<vmem>>, vector<16x16xbf16>
    %cst_27 = arith.constant dense<0.000000e+00> : vector<16x16xf32>
    %43 = tpu.matmul %11, %42, %cst_27 {dimension_numbers = #tpu.dot_dimension_numbers<[1], [0], [0], [1], [0, 0, 1, 1], [], []>} : vector<16x16xbf16>, vector<16x16xbf16>, vector<16x16xf32> -> vector<16x16xf32>
    %c0_28 = arith.constant 0 : index
    %c0_29 = arith.constant 0 : index
    %44 = vector.load %arg11[%c0_28, %c0_29] : memref<1x16xf32, #tpu.memory_space<vmem>>, vector<1x16xf32>
    %45 = vector.broadcast %44 : vector<1x16xf32> to vector<16x16xf32>
    %46 = arith.addf %43, %45 : vector<16x16xf32>
    %cst_30 = arith.constant 0.000000e+00 : f32
    %47 = vector.broadcast %cst_30 : f32 to vector<16x16xf32>
    %48 = arith.maximumf %46, %47 : vector<16x16xf32>
    %49 = arith.truncf %48 : vector<16x16xf32> to vector<16x16xbf16>
    %c0_31 = arith.constant 0 : index
    %c0_32 = arith.constant 0 : index
    %50 = vector.load %arg12[%c0_31, %c0_32] : memref<16x8xbf16, #tpu.memory_space<vmem>>, vector<16x8xbf16>
    %cst_33 = arith.constant dense<0.000000e+00> : vector<16x8xf32>
    %51 = tpu.matmul %49, %50, %cst_33 {dimension_numbers = #tpu.dot_dimension_numbers<[1], [0], [0], [1], [0, 0, 1, 1], [], []>} : vector<16x16xbf16>, vector<16x8xbf16>, vector<16x8xf32> -> vector<16x8xf32>
    %c0_34 = arith.constant 0 : index
    %c0_35 = arith.constant 0 : index
    %52 = vector.load %arg13[%c0_34, %c0_35] : memref<1x8xf32, #tpu.memory_space<vmem>>, vector<1x8xf32>
    %53 = vector.broadcast %52 : vector<1x8xf32> to vector<16x8xf32>
    %54 = arith.addf %51, %53 : vector<16x8xf32>
    %55 = arith.mulf %8, %41 : vector<16x8xf32>
    %56 = arith.addf %55, %26 : vector<16x8xf32>
    %57 = arith.truncf %56 : vector<16x8xf32> to vector<16x8xbf16>
    %c0_36 = arith.constant 0 : index
    %c0_37 = arith.constant 0 : index
    %58 = vector.load %arg14[%c0_36, %c0_37] : memref<8x16xbf16, #tpu.memory_space<vmem>>, vector<8x16xbf16>
    %cst_38 = arith.constant dense<0.000000e+00> : vector<16x16xf32>
    %59 = tpu.matmul %57, %58, %cst_38 {dimension_numbers = #tpu.dot_dimension_numbers<[1], [0], [0], [1], [0, 0, 1, 1], [], []>} : vector<16x8xbf16>, vector<8x16xbf16>, vector<16x16xf32> -> vector<16x16xf32>
    %c0_39 = arith.constant 0 : index
    %c0_40 = arith.constant 0 : index
    %60 = vector.load %arg15[%c0_39, %c0_40] : memref<1x16xf32, #tpu.memory_space<vmem>>, vector<1x16xf32>
    %61 = vector.broadcast %60 : vector<1x16xf32> to vector<16x16xf32>
    %62 = arith.addf %59, %61 : vector<16x16xf32>
    %cst_41 = arith.constant 0.000000e+00 : f32
    %63 = vector.broadcast %cst_41 : f32 to vector<16x16xf32>
    %64 = arith.maximumf %62, %63 : vector<16x16xf32>
    %65 = arith.truncf %64 : vector<16x16xf32> to vector<16x16xbf16>
    %c2_i32 = arith.constant 2 : i32
    %66 = arith.cmpi eq, %arg0, %c2_i32 : i32
    %67 = arith.extui %66 : i1 to i32
    %c0_i32_42 = arith.constant 0 : i32
    %68 = arith.cmpi ne, %67, %c0_i32_42 : i32
    scf.if %68 {
      %c0_68 = arith.constant 0 : index
      %c0_69 = arith.constant 0 : index
      %112 = vector.load %arg5[%c0_68, %c0_69] : memref<16x8xf32, #tpu.memory_space<vmem>>, vector<16x8xf32>
      %113 = arith.mulf %56, %112 : vector<16x8xf32>
      %114 = arith.truncf %113 : vector<16x8xf32> to vector<16x8xbf16>
      %cst_70 = arith.constant dense<0.000000e+00> : vector<16x16xf32>
      %115 = tpu.matmul %114, %114, %cst_70 {dimension_numbers = #tpu.dot_dimension_numbers<[1], [1], [0], [0], [0, 0, 1, 0], [], []>} : vector<16x8xbf16>, vector<16x8xbf16>, vector<16x16xf32> -> vector<16x16xf32>
      %c0_71 = arith.constant 0 : index
      %c0_72 = arith.constant 0 : index
      %116 = vector.load %arg19[%c0_71, %c0_72] : memref<16x16xf32, #tpu.memory_space<vmem>>, vector<16x16xf32>
      tpu.vector_store %arg19[%c0_71, %c0_72], %115 {strides = array<i32>} : memref<16x16xf32, #tpu.memory_space<vmem>>, vector<16x16xf32>,
    } else {
    }
    %c0_43 = arith.constant 0 : index
    %c0_44 = arith.constant 0 : index
    %c0_45 = arith.constant 0 : index
    %69 = vector.load %arg20[%c0_43, %c0_44, %c0_45] : memref<1x16x16xf32, #tpu.memory_space<vmem>>, vector<1x16x16xf32>
    %70 = vector.shape_cast %69 : vector<1x16x16xf32> to vector<16x16xf32>
    %c0_46 = arith.constant 0 : index
    %c0_47 = arith.constant 0 : index
    %c0_48 = arith.constant 0 : index
    %71 = vector.load %arg21[%c0_46, %c0_47, %c0_48] : memref<1x16x16xf32, #tpu.memory_space<vmem>>, vector<1x16x16xf32>
    %72 = vector.shape_cast %71 : vector<1x16x16xf32> to vector<16x16xf32>
    %73 = arith.truncf %70 : vector<16x16xf32> to vector<16x16xbf16>
    %c0_49 = arith.constant 0 : index
    %c0_50 = arith.constant 0 : index
    %74 = vector.load %arg16[%c0_49, %c0_50] : memref<32x64xbf16, #tpu.memory_space<vmem>>, vector<32x64xbf16>
    %75 = vector.extract_strided_slice %74 {offsets = [0, 0], sizes = [16, 64], strides = [1, 1]} : vector<32x64xbf16> to vector<16x64xbf16>
    %cst_51 = arith.constant dense<0.000000e+00> : vector<16x64xf32>
    %76 = tpu.matmul %6, %75, %cst_51 {dimension_numbers = #tpu.dot_dimension_numbers<[1], [0], [0], [1], [0, 0, 1, 1], [], []>} : vector<16x16xbf16>, vector<16x64xbf16>, vector<16x64xf32> -> vector<16x64xf32>
    %77 = vector.extract_strided_slice %74 {offsets = [16, 0], sizes = [16, 64], strides = [1, 1]} : vector<32x64xbf16> to vector<16x64xbf16>
    %cst_52 = arith.constant dense<0.000000e+00> : vector<16x64xf32>
    %78 = tpu.matmul %65, %77, %cst_52 {dimension_numbers = #tpu.dot_dimension_numbers<[1], [0], [0], [1], [0, 0, 1, 1], [], []>} : vector<16x16xbf16>, vector<16x64xbf16>, vector<16x64xf32> -> vector<16x64xf32>
    %79 = arith.addf %76, %78 : vector<16x64xf32>
    %c0_53 = arith.constant 0 : index
    %c0_54 = arith.constant 0 : index
    %80 = vector.load %arg17[%c0_53, %c0_54] : memref<16x64xbf16, #tpu.memory_space<vmem>>, vector<16x64xbf16>
    %cst_55 = arith.constant dense<0.000000e+00> : vector<16x64xf32>
    %81 = tpu.matmul %73, %80, %cst_55 {dimension_numbers = #tpu.dot_dimension_numbers<[1], [0], [0], [1], [0, 0, 1, 1], [], []>} : vector<16x16xbf16>, vector<16x64xbf16>, vector<16x64xf32> -> vector<16x64xf32>
    %82 = arith.addf %79, %81 : vector<16x64xf32>
    %83 = arith.truncf %82 : vector<16x64xf32> to vector<16x64xbf16>
    %cst_56 = arith.constant dense<0.000000e+00> : vector<16x64xf32>
    %84 = tpu.matmul %4, %83, %cst_56 {dimension_numbers = #tpu.dot_dimension_numbers<[1], [0], [0], [1], [0, 0, 1, 1], [], []>} : vector<16x16xbf16>, vector<16x64xbf16>, vector<16x64xf32> -> vector<16x64xf32>
    %85 = vector.extract_strided_slice %84 {offsets = [0, 0], sizes = [16, 48], strides = [1, 1]} : vector<16x64xf32> to vector<16x48xf32>
    %86 = arith.negf %85 : vector<16x48xf32>
    %87 = math.exp %86 : vector<16x48xf32>
    %cst_57 = arith.constant 1.000000e+00 : f32
    %88 = vector.broadcast %cst_57 : f32 to vector<16x48xf32>
    %89 = arith.addf %88, %87 : vector<16x48xf32>
    %90 = arith.divf %88, %89 : vector<16x48xf32>
    %91 = vector.extract_strided_slice %90 {offsets = [0, 0], sizes = [16, 16], strides = [1, 1]} : vector<16x48xf32> to vector<16x16xf32>
    %92 = vector.extract_strided_slice %90 {offsets = [0, 16], sizes = [16, 16], strides = [1, 1]} : vector<16x48xf32> to vector<16x16xf32>
    %93 = vector.extract_strided_slice %90 {offsets = [0, 32], sizes = [16, 16], strides = [1, 1]} : vector<16x48xf32> to vector<16x16xf32>
    %94 = vector.extract_strided_slice %84 {offsets = [0, 48], sizes = [16, 16], strides = [1, 1]} : vector<16x64xf32> to vector<16x16xf32>
    %95 = math.tanh %94 : vector<16x16xf32>
    %96 = arith.mulf %92, %70 : vector<16x16xf32>
    %97 = arith.mulf %91, %95 : vector<16x16xf32>
    %98 = arith.addf %96, %97 : vector<16x16xf32>
    %99 = math.tanh %72 : vector<16x16xf32>
    %100 = arith.mulf %93, %99 : vector<16x16xf32>
    %c0_58 = arith.constant 0 : index
    %c0_59 = arith.constant 0 : index
    %c0_60 = arith.constant 0 : index
    %101 = vector.load %arg20[%c0_58, %c0_59, %c0_60] : memref<1x16x16xf32, #tpu.memory_space<vmem>>, vector<1x16x16xf32>
    %102 = vector.shape_cast %101 : vector<1x16x16xf32> to vector<16x16xf32>
    %103 = vector.shape_cast %100 : vector<16x16xf32> to vector<1x16x16xf32>
    tpu.vector_store %arg20[%c0_58, %c0_59, %c0_60], %103 {strides = array<i32>} : memref<1x16x16xf32, #tpu.memory_space<vmem>>, vector<1x16x16xf32>,
    %c0_61 = arith.constant 0 : index
    %c0_62 = arith.constant 0 : index
    %c0_63 = arith.constant 0 : index
    %104 = vector.load %arg21[%c0_61, %c0_62, %c0_63] : memref<1x16x16xf32, #tpu.memory_space<vmem>>, vector<1x16x16xf32>
    %105 = vector.shape_cast %104 : vector<1x16x16xf32> to vector<16x16xf32>
    %106 = vector.shape_cast %98 : vector<16x16xf32> to vector<1x16x16xf32>
    tpu.vector_store %arg21[%c0_61, %c0_62, %c0_63], %106 {strides = array<i32>} : memref<1x16x16xf32, #tpu.memory_space<vmem>>, vector<1x16x16xf32>,
    %cst_64 = arith.constant 0.000000e+00 : f32
    %107 = vector.broadcast %cst_64 : f32 to vector<16x104xf32>
    %108 = tpu.concatenate %25, %54, %107 in 1 : vector<16x16xf32>, vector<16x8xf32>, vector<16x104xf32> -> vector<16x128xf32>
    %c0_65 = arith.constant 0 : index
    %c0_66 = arith.constant 0 : index
    %c0_67 = arith.constant 0 : index
    %109 = vector.load %arg18[%c0_65, %c0_66, %c0_67] : memref<1x16x128xf32, #tpu.memory_space<vmem>>, vector<1x16x128xf32>
    %110 = vector.shape_cast %109 : vector<1x16x128xf32> to vector<16x128xf32>
    %111 = vector.shape_cast %108 : vector<16x128xf32> to vector<1x16x128xf32>
    tpu.vector_store %arg18[%c0_65, %c0_66, %c0_67], %111 {strides = array<i32>} : memref<1x16x128xf32, #tpu.memory_space<vmem>>, vector<1x16x128xf32>,
    return
  }
  func.func @transform_0(%arg0: i32, %arg1: memref<3xi32, #tpu.memory_space<smem>>) -> (i32, i32, i32) {
    %0 = arith.index_cast %arg0 : i32 to index
    %1 = memref.load %arg1[%0] : memref<3xi32, #tpu.memory_space<smem>>
    %c0_i32 = arith.constant 0 : i32
    %c0_i32_0 = arith.constant 0 : i32
    %c0_i32_1 = arith.constant 0 : i32
    return %1, %c0_i32, %c0_i32_0 : i32, i32, i32
  }
  func.func @transform_1(%arg0: i32, %arg1: memref<3xi32, #tpu.memory_space<smem>>) -> (i32, i32, i32) {
    %c0_i32 = arith.constant 0 : i32
    %c0_i32_0 = arith.constant 0 : i32
    %c0_i32_1 = arith.constant 0 : i32
    return %arg0, %c0_i32, %c0_i32_0 : i32, i32, i32
  }
  func.func @transform_2(%arg0: i32, %arg1: memref<3xi32, #tpu.memory_space<smem>>) -> (i32, i32, i32) {
    %c0_i32 = arith.constant 0 : i32
    %c0_i32_0 = arith.constant 0 : i32
    %c0_i32_1 = arith.constant 0 : i32
    return %arg0, %c0_i32, %c0_i32_0 : i32, i32, i32
  }
  func.func @transform_3(%arg0: i32, %arg1: memref<3xi32, #tpu.memory_space<smem>>) -> (i32, i32) {
    %c0_i32 = arith.constant 0 : i32
    %c0_i32_0 = arith.constant 0 : i32
    %c0_i32_1 = arith.constant 0 : i32
    return %c0_i32, %c0_i32_0 : i32, i32
  }
  func.func @transform_4(%arg0: i32, %arg1: memref<3xi32, #tpu.memory_space<smem>>) -> (i32, i32, i32) {
    %c0_i32 = arith.constant 0 : i32
    %c0_i32_0 = arith.constant 0 : i32
    %c0_i32_1 = arith.constant 0 : i32
    %c0_i32_2 = arith.constant 0 : i32
    return %c0_i32, %c0_i32_0, %c0_i32_1 : i32, i32, i32
  }
  func.func @transform_5(%arg0: i32, %arg1: memref<3xi32, #tpu.memory_space<smem>>) -> (i32, i32) {
    %c0_i32 = arith.constant 0 : i32
    %c0_i32_0 = arith.constant 0 : i32
    %c0_i32_1 = arith.constant 0 : i32
    return %c0_i32, %c0_i32_0 : i32, i32
  }
  func.func @transform_6(%arg0: i32, %arg1: memref<3xi32, #tpu.memory_space<smem>>) -> (i32, i32) {
    %c0_i32 = arith.constant 0 : i32
    %c0_i32_0 = arith.constant 0 : i32
    %c0_i32_1 = arith.constant 0 : i32
    return %c0_i32, %c0_i32_0 : i32, i32
  }
  func.func @transform_7(%arg0: i32, %arg1: memref<3xi32, #tpu.memory_space<smem>>) -> (i32, i32) {
    %c0_i32 = arith.constant 0 : i32
    %c0_i32_0 = arith.constant 0 : i32
    %c0_i32_1 = arith.constant 0 : i32
    return %c0_i32, %c0_i32_0 : i32, i32
  }
  func.func @transform_8(%arg0: i32, %arg1: memref<3xi32, #tpu.memory_space<smem>>) -> (i32, i32) {
    %c0_i32 = arith.constant 0 : i32
    %c0_i32_0 = arith.constant 0 : i32
    %c0_i32_1 = arith.constant 0 : i32
    return %c0_i32, %c0_i32_0 : i32, i32
  }
  func.func @transform_9(%arg0: i32, %arg1: memref<3xi32, #tpu.memory_space<smem>>) -> (i32, i32) {
    %c0_i32 = arith.constant 0 : i32
    %c0_i32_0 = arith.constant 0 : i32
    %c0_i32_1 = arith.constant 0 : i32
    return %c0_i32, %c0_i32_0 : i32, i32
  }
  func.func @transform_10(%arg0: i32, %arg1: memref<3xi32, #tpu.memory_space<smem>>) -> (i32, i32) {
    %c0_i32 = arith.constant 0 : i32
    %c0_i32_0 = arith.constant 0 : i32
    %c0_i32_1 = arith.constant 0 : i32
    return %c0_i32, %c0_i32_0 : i32, i32
  }
  func.func @transform_11(%arg0: i32, %arg1: memref<3xi32, #tpu.memory_space<smem>>) -> (i32, i32) {
    %c0_i32 = arith.constant 0 : i32
    %c0_i32_0 = arith.constant 0 : i32
    %c0_i32_1 = arith.constant 0 : i32
    return %c0_i32, %c0_i32_0 : i32, i32
  }
  func.func @transform_12(%arg0: i32, %arg1: memref<3xi32, #tpu.memory_space<smem>>) -> (i32, i32) {
    %c0_i32 = arith.constant 0 : i32
    %c0_i32_0 = arith.constant 0 : i32
    %c0_i32_1 = arith.constant 0 : i32
    return %c0_i32, %c0_i32_0 : i32, i32
  }
  func.func @transform_13(%arg0: i32, %arg1: memref<3xi32, #tpu.memory_space<smem>>) -> (i32, i32) {
    %c0_i32 = arith.constant 0 : i32
    %c0_i32_0 = arith.constant 0 : i32
    %c0_i32_1 = arith.constant 0 : i32
    return %c0_i32, %c0_i32_0 : i32, i32
  }
  func.func @transform_14(%arg0: i32, %arg1: memref<3xi32, #tpu.memory_space<smem>>) -> (i32, i32) {
    %c0_i32 = arith.constant 0 : i32
    %c0_i32_0 = arith.constant 0 : i32
    %c0_i32_1 = arith.constant 0 : i32
    return %c0_i32, %c0_i32_0 : i32, i32
  }
  func.func @transform_15(%arg0: i32, %arg1: memref<3xi32, #tpu.memory_space<smem>>) -> (i32, i32) {
    %c0_i32 = arith.constant 0 : i32
    %c0_i32_0 = arith.constant 0 : i32
    %c0_i32_1 = arith.constant 0 : i32
    return %c0_i32, %c0_i32_0 : i32, i32
  }
  func.func @transform_16(%arg0: i32, %arg1: memref<3xi32, #tpu.memory_space<smem>>) -> (i32, i32, i32) {
    %c0_i32 = arith.constant 0 : i32
    %c0_i32_0 = arith.constant 0 : i32
    %c0_i32_1 = arith.constant 0 : i32
    return %arg0, %c0_i32, %c0_i32_0 : i32, i32, i32
  }
  func.func @transform_17(%arg0: i32, %arg1: memref<3xi32, #tpu.memory_space<smem>>) -> (i32, i32) {
    %c0_i32 = arith.constant 0 : i32
    %c0_i32_0 = arith.constant 0 : i32
    %c0_i32_1 = arith.constant 0 : i32
    return %c0_i32, %c0_i32_0 : i32, i32
  }
  func.func @transform_18(%arg0: i32, %arg1: memref<3xi32, #tpu.memory_space<smem>>) -> (i32, i32, i32) {
    %c0_i32 = arith.constant 0 : i32
    %c0_i32_0 = arith.constant 0 : i32
    %c0_i32_1 = arith.constant 0 : i32
    %c0_i32_2 = arith.constant 0 : i32
    return %c0_i32, %c0_i32_0, %c0_i32_1 : i32, i32, i32
  }
}

</mosaic_0001>

<bundles_post_ra>
// kernel: tpu_custom_call.1
= control target key start
LH: loop header
LB: loop body
LE: loop exit
PB: predicated region body
PF: predicated region fallthrough
CT: control target
= control target key end

     0   :  { %s2588_s0 = inlined_call_operand.vmem [shape: s32[3], index: 0, kind: input, shape index: {}]   ;;  %s2589_s1 = inlined_call_operand.vmem [shape: bf16[1,16,16], index: 1, kind: input, shape index: {}]   ;;  %s2590_s2 = inlined_call_operand.vmem [shape: bf16[3,16,16], index: 2, kind: input, shape index: {}]   ;;  %s2591_s3 = inlined_call_operand.vmem [shape: f32[3,16,8], index: 3, kind: input, shape index: {}]   ;;  %s2592_s4 = inlined_call_operand.vmem [shape: f32[16,8], index: 4, kind: input, shape index: {}]   ;;  %s2593_s5 = inlined_call_operand.vmem [shape: f32[1,16,16], index: 5, kind: input, shape index: {}]   ;;  %s2594_s6 = inlined_call_operand.vmem [shape: bf16[16,16], index: 6, kind: input, shape index: {}]   ;;  %s2595_s7 = inlined_call_operand.vmem [shape: bf16[16,16], index: 7, kind: input, shape index: {}]   ;;  %s2596_s8 = inlined_call_operand.vmem [shape: bf16[16,16], index: 8, kind: input, shape index: {}]   ;;  %s2597_s9 = inlined_call_operand.vmem [shape: bf16[16,16], index: 9, kind: input, shape index: {}]   ;;  %s2598_s10 = inlined_call_operand.hbm [shape: f32[1,16], index: 10, kind: input, shape index: {}]   ;;  %s2599_s11 = inlined_call_operand.vmem [shape: bf16[16,8], index: 11, kind: input, shape index: {}]   ;;  %s2600_s12 = inlined_call_operand.vmem [shape: f32[1,8], index: 12, kind: input, shape index: {}]   ;;  %s2601_s13 = inlined_call_operand.vmem [shape: bf16[8,16], index: 13, kind: input, shape index: {}]   ;;  %s2602_s14 = inlined_call_operand.vmem [shape: f32[1,16], index: 14, kind: input, shape index: {}]   ;;  %s2603_s15 = inlined_call_operand.vmem [shape: bf16[32,64], index: 15, kind: input, shape index: {}]   ;;  %s2604_s16 = inlined_call_operand.vmem [shape: bf16[16,64], index: 16, kind: input, shape index: {}]   ;;  %s2605_s17 = inlined_call_operand.hbm [shape: f32[3,16,128], index: 17, kind: output, shape index: {0}]   ;;  %s2606_s18 = inlined_call_operand.hbm [shape: f32[16,16], index: 18, kind: output, shape index: {1}]   ;;  %s2607_s19 = inlined_call_operand.hbm [shape: f32[1,16,16], index: 19, kind: output, shape index: {2}]  }
   0x1   :  { %2626 = sst [smem:[#allocation24_spill]] %s2588_s0 }
   0x2   :  { %2627 = sst [smem:[#allocation25_spill]] %s2589_s1  ;;  %s2635_s20 = sld [smem:[#allocation24_spill]] }
   0x3   :  { %2628 = sst [smem:[#allocation26_spill]] %s2590_s2 }
   0x4   :  { %2629 = sst [smem:[#allocation27_spill]] %s2591_s3 }
   0x5   :  { %2630 = sst [smem:[#allocation28_spill]] %s2592_s4 }
   0x6   :  { %2631 = sst [smem:[#allocation29_spill]] %s2598_s10 }
   0x7   :  { %2632 = sst [smem:[#allocation30_spill]] %s2605_s17 }
   0x8   :  { %2633 = sst [smem:[#allocation31_spill]] %s2606_s18  ;;  %s25_s4 = sshll.u32 %s2635_s20, 4  ;;  %s26_s4 = int_to_ptr.vmem [resolvable:$true] %s25_s4 }
   0x9   :  { %2634 = sst [smem:[#allocation32_spill]] %s2607_s19  ;;  %s1932_s21 = scalar_lea.vmem %s26_s4, 16 }
   0xa   :  { %p1933_p0 = scmp.ne.s32.totalorder %s26_s4, %s1932_s21  ;;  %p1937_p1 = scmp.lt.s32.totalorder %s26_s4, %s26_s4 }
   0xb   :  { %p1938_p2 = scmp.lt.s32.totalorder %s1932_s21, %s1932_s21 }
   0xd   :  { %p1939_p3 = por %p1938_p2, %p1937_p1 }
   0xf   :  { %p1940_p4 = pnand %p1939_p3, %p1933_p0 }
  0x11   :  { %1943 = shalt.err (!%p1940_p4)  }
  0x12   :  { %s2098_s1 = smov [#allocation4]  }
  0x13   :  { %28 = dma.vmem_to_smem %s26_s4, 16, %s2098_s1, [#allocation3] }
  0x14   :  { %2068 = dma.done.wait [#allocation3], 16 }
  0x15   :  { %2069 = vsyncadd [#allocation3], 4294967280 }
  0x16   :  { %30 = sfence }
  0x17   :  { %31 = vsyncpa [#allocation6], 0 }
  0x18   :  { %32 = vsyncpa [#allocation7], 0 }
  0x19   :  { %34 = vsyncpa [#allocation7 + $0x1], 0 }
  0x1a   :  { %35 = vsyncpa [#allocation10], 0  ;;  %s2218_s22 = smov 0   ;;  %s2220_s2 = smov 0  }
  0x1b   :  { %s2222_s23 = smov 0   ;;  %s2224_s24 = smov 0  }
  0x1c LB: > { %2636 = sst [smem:[#allocation16_spill]] %s2084_s22  ;;  %s2239_s4 = sadd.s32 4294967295, %s2096_s24   ;;  %s2096_s24 = sphi %s2224_s24, %s2677_s24   ;;  %s2092_s23 = sphi %s2222_s23, %s2680_s23   ;;  %s2088_s2 = sphi %s2220_s2, %s2679_s2   ;;  %s2084_s22 = sphi %s2218_s22, %s2678_s22  }
  0x1d   : > { %2637 = sst [smem:[#allocation17_spill]] %s2088_s2  ;;  %s1651_s25 = sadd.s32 4294967294, %s2096_s24  }
  0x1e   : > { %2638 = sst [smem:[#allocation18_spill]] %s2092_s23  ;;  %s2243_s3 = sadd.s32 1, %s2096_s24  }
  0x1f   : > { %2639 = sst [smem:[#allocation19_spill]] %s2096_s24  ;;  %s401_s26 = sadd.s32 1, %s2092_s23 }
  0x20   : > { %2640 = sst [smem:[#allocation20_spill]] %s2243_s3  ;;  %s398_s27 = ssub.s32 %s2096_s24, %s2243_s3 }
  0x21   : > { %p411_p5 = scmp.ne.s32.totalorder %s2092_s23, %s2088_s2  ;;  %p399_p6 = scmp.eq.s32.totalorder %s398_s27, 0 }
  0x22   : > { %p2613_p7 = scmp.eq.s32.totalorder %s2239_s4, 2  ;;  %p417_p8 = scmp.ne.s32.totalorder %s2088_s2, %s2084_s22 }
  0x23   : > { %p418_p9 = scmp.eq.s32.totalorder %s1651_s25, 2  ;;  %p1652_p12 = scmp.ge.s32.totalorder %s2096_s24, 1 }
  0x24   : > { %s2254_s28 = scalar_select %p399_p6, %s2092_s23, %s401_s26  }
  0x25   : > { %p2258_p10 = por %p2613_p7, %p411_p5  ;;  %p2262_p11 = por %p418_p9, %p417_p8 }
  0x26   : > { %2641 = sst [smem:[#allocation21_spill]] %s2254_s28  ;;  %p467_p13 = scmp.lt.s32.totalorder %s2096_s24, 4 }
  0x27   : > { %s2642_s29 = scalar_select %p2258_p10, 1, 0 }
  0x28   : > { %s2644_s0 = scalar_select %p2262_p11, 1, 0 }
  0x29   : > { %2643 = sst [smem:[#allocation22_spill]] %s2642_s29  ;;  %p2614_p1 = scmp.eq.s32.totalorder %s2239_s4, 0 }
  0x2a   : > { %2645 = sst [smem:[#allocation23_spill]] %s2644_s0  ;;  %p2270_p2 = pnand %p1652_p12, %p467_p13 }
  0x2b   : > { %s2099_s20 = smov [#allocation5]   ;;  %s2648_s10 = sld [smem:[#allocation29_spill]] }
  0x2c   : > { %s2646_s30 = scalar_select %p2270_p2, 1, 0 }
  0x2d   : > { %s498_s21 = sshll.u32 %s2099_s20, 4  ;;  %p1835_p3 = pneg %p2270_p2  ;;  %s499_s21 = int_to_ptr.vmem [resolvable:$true] %s498_s21 }
  0x2f   : > { %p2278_p4 = pnand %p2614_p1, %p1835_p3 }
  0x31   : > { %s1944_s27 = scalar_lea.hbm %s2648_s10, 16  ;;  %p1946_p6 = pneg %p2278_p4 }
  0x32   : > { %p1945_p5 = scmp.ne.s32.totalorder %s2648_s10, %s1944_s27  ;;  %p1951_p12 = scmp.lt.u32.totalorder %s1944_s27, %s2648_s10 }
  0x34   : > { %p1947_p8 = pnand %p1946_p6, %p1945_p5 }
  0x36   : > { %p1948_p9 = pneg %p1947_p8 }
  0x38   : > { %p1953_p13 = pnand %p1951_p12, %p1948_p9 }
  0x3a   : > { %1956 = shalt.err (!%p1953_p13)
}
  0x3b   : > { %s1957_s0 = scalar_lea.vmem %s499_s21, 16  ;;  %s1964_s25 = scalar_lea.vmem %s499_s21, 32 }
  0x3c   : > { %p1958_p3 = scmp.ne.s32.totalorder %s499_s21, %s1957_s0  ;;  %p1965_p1 = scmp.lt.s32.totalorder %s499_s21, %s499_s21 }
  0x3d   : > { %p1966_p11 = scmp.lt.s32.totalorder %s1964_s25, %s1957_s0 }
  0x3e   : > { %p1960_p7 = pnand %p1958_p3, %p1946_p6 }
  0x3f   : > { %p1967_p10 = por %p1966_p11, %p1965_p1 }
  0x40   : > { %p1961_p0 = pneg %p1960_p7 }
  0x42   : > { %p1968_p2 = pnand %p1967_p10, %p1961_p0 }
  0x44   : > { %1971 = shalt.err (!%p1968_p2)
}
  0x45   : > { %1838 = dma.hbm_to_vmem [thread:$0]  (!%p2278_p4), %s2648_s10, 16, %s499_s21, [#allocation6]  }
  0x46   : > { %p2649_p5 = scmp.ne.s32.totalorder %s2646_s30, 0 }
  0x47   : > { %p2650_p8 = scmp.eq.s32.totalorder (!%p2649_p5), %s2239_s4, 0 }
  0x48   : > { %555 = sbr.rel (%p2649_p5) target bundleno = 2184 (0x888), region = 84 }
  0x4f   : > { %2071 = dma.done.wait (%p2650_p8), [#allocation6], 16   ;;  %p2651_p7 = pmov %p2650_p8 }
  0x50   : > { %s2624_s3 = sand.u32 1, %s2088_s2   ;;  %p627_p10 = scmp.lt.s32.totalorder %s2239_s4, 2 }
  0x51   : > { %2073 = vsyncadd (%p2651_p7), [#allocation6], 4294967280  ;;  %s620_s0 = sld [smem:[#allocation4 + %s2239_s4]]  ;;  %s1657_s1 = sshll.u32 %s2624_s3, 4 }
  0x52   : > { %s628_s21 = scalar_select %p627_p10, %s2239_s4, 2 }
  0x53   : > { %s2652_s25 = sld [smem:[#allocation26_spill]]  ;;  %s2653_s22 = sld [smem:[#allocation27_spill]] }
  0x54   : > { %s1704_s26 = sshll.u32 %s628_s21, 3  ;;  %s1705_s30 = sshll.u32 %s628_s21, 4 }
  0x55   : > { %s2654_s2 = sld [smem:[#allocation25_spill]]  ;;  %s2325_s18 = scalar_lea.vmem [#allocation8], %s1657_s1 }
  0x56   : > { %p2655_p0 = scmp.ne.s32.totalorder %s2239_s4, 0 }
  0x57   : > { %p621_p11 = scmp.lt.s32.totalorder %s620_s0, 0  ;;  %v642_v0 = vld [vmem:[%s2593_s5] sm:$0xff] (!%p2655_p0)  ;;  %vm644_vm0 = vcmask (!%p2655_p0), 130048   ;;  %v643_v1 = vld [vmem:[%s2593_s5 + $0x8] sm:$0xff] (!%p2655_p0) }
  0x58   : > { %641 = sbr.rel (%p2655_p0) target bundleno = 95 (0x5f), region = 92  ;;  %645 = vst.msk [vmem:[#allocation11] sm:$0xff] (!%p2655_p0), %vm644_vm0, %v642_v0  ;;  %646 = vst.msk [vmem:[#allocation11 + $0x8] sm:$0xff] (!%p2655_p0), %vm644_vm0, %v643_v1 }
  0x59   : > { %s2313_s23 = scalar_lea.vmem %s2652_s25, %s1704_s26  ;;  %s2318_s24 = scalar_lea.vmem %s2653_s22, %s1705_s30  ;;  %649 = vst.msk [vmem:[#allocation2] sm:$0xff] (!%p2655_p0), %vm644_vm0, %v642_v0  ;;  %650 = vst.msk [vmem:[#allocation2 + $0x8] sm:$0xff] (!%p2655_p0), %vm644_vm0, %v643_v1 }
  0x5a   : > { %s2682_s0 = smov (!%p621_p11, %s620_s0), 0 }
  0x5b   : > { %s1703_s19 = sshll.u32 %s2682_s0, 3 }
  0x5c   : > { %s2323_s3 = scalar_lea.vmem %s2654_s2, %s1703_s19 }
  0x5f PF: > { %v1898_v2 = vld [vmem:[%s2595_s7] sm:$0xff]   ;;  %v2100_v3 = vmov 0.0   ;;  %v658_v5 = vld [vmem:[#allocation11 + $0x8] sm:$0xff]  ;;  %vm2101_vm1 = vmmov 0   ;;  %vm670_vm2 = vcmask 130048   ;;  %vm1096_vm3 = vcmask 1043456  }
  0x60   : > { %1733 = vmatprep.subr.bf16.mxu0 %v2100_v3  ;;  %v657_v4 = vld [vmem:[#allocation11] sm:$0xff]  ;;  %1745 = vmatprep.subr.bf16.mxu1 %v2100_v3  ;;  %v1675_v48 = vld [vmem:[#allocation5] ss:$0 sm:$0xff]  ;;  %s2102_s28 = smov 120   ;;  %vm1092_vm8 = vcmask 64512   ;;  %p1683_p1 = scmp.ne.s32.totalorder %s2239_s4, 2 }
  0x61   : > { %1734 = vmatpush3.bf16.msra.mxu0 %v1898_v2  ;;  %1735 = vmatprep.mubr.msk.bf16.mxu0 %vm2101_vm1, %v2100_v3  ;;  %v659_v6 = vpack.c.bf16 %v658_v5, %v657_v4  ;;  %v1899_v7 = vld [vmem:[%s2594_s6] sm:$0xff]   ;;  %s2656_s19 = sld [smem:[#allocation28_spill]] (!%p1683_p1)  ;;  %vm2104_vm9 = vmmov (!%p1683_p1), 0  }
  0x62   : > { %1739 = vmatprep.subr.bf16.mxu0 %v2100_v3  ;;  %1747 = vmatprep.mubr.msk.bf16.mxu1 %vm2101_vm1, %v2100_v3  ;;  %v2353_v8 = vld [vmem:[%s2313_s23] sm:$0xff]  }
  0x63   : > { %v2360_v14 = vld [vmem:[%s2323_s3] sm:$0xff]  }
  0x64   : > { %1736 = vmatmul.mubr.msk.bf16.vlgmr.msra.gmra.mrb[0].mxu0 %vm670_vm2, %v659_v6  ;;  %v1902_v15 = vld [vmem:[%s2596_s8] sm:$0xff]  }
  0x65   : > { %1740 = vmatpush3.bf16.msra.mxu0 %v1899_v7  ;;  %1741 = vmatprep.mubr.msk.bf16.mxu0 %vm2101_vm1, %v2100_v3  ;;  %v1903_v23 = vld [vmem:[%s2597_s9] sm:$0xff]  }
  0x66   : > { %1757 = vmatprep.subr.bf16.mxu0 %v2100_v3  ;;  %v1904_v56 = vld [vmem:[%s2599_s11] sm:$0xff]  }
  0x67   : > { %v1084_v60 = vld [vmem:[%s2601_s13] sm:$0xf] }
  0x68   : > { %v1098_v63 = vsel %vm1096_vm3, %v1084_v60, 0 }
  0x70   : > { %1742 = vmatmul.mubr.msk.bf16.vlgmr.msra.gmra.mrb[0].mxu0 %vm670_vm2, %v2353_v8 }
  0x71   : > { %1759 = vmatprep.mubr.msk.bf16.mxu0 %vm2101_vm1, %v2100_v3 }
 0x143   : > { %v763_v9 = vpop.f32.mrb[0].mxu0 }
 0x144   : > { %v1743_v10 = vpop.f32.mrb[1].mxu0 }
 0x145   : > { %v766_v11 = vpop.f32.mrb[2].mxu0 }
 0x146   : > { %v770_v12 = vpack.c.bf16 %v766_v11, %v763_v9  ;;  %v1744_v13 = vpop.f32.mrb[3].mxu0 }
 0x148   : > { %1746 = vmatpush3.bf16.msra.mxu1 %v770_v12 }
 0x149   : > { %1751 = vmatprep.subr.bf16.mxu1 %v2100_v3 }
 0x14b   : > { %1748 = vmatmul.mubr.msk.bf16.vlgmr.msra.gmra.mrb[0].mxu1 %vm670_vm2, %v2360_v14 }
 0x14c   : > { %1753 = vmatprep.mubr.msk.bf16.mxu1 %vm2101_vm1, %v2100_v3  ;;  %1752 = vmatpush3.bf16.msra.mxu1 %v1902_v15  ;;  %v655_v15 = vld [vmem:[%s2318_s24] sm:$0xff] }
 0x14d   : > { %1763 = vmatprep.subr.bf16.mxu1 %v2100_v3 }
 0x21e   : > { %v813_v16 = vpop.f32.mrb[0].mxu1 }
 0x21f   : > { %v1749_v17 = vpop.f32.mrb[1].mxu1  ;;  %v820_v19 = vmax.f32 %v813_v16, 0.0 }
 0x220   : > { %v816_v18 = vpop.f32.mrb[2].mxu1  ;;  %v656_v17 = vld [vmem:[%s2318_s24 + $0x8] sm:$0xff] }
 0x221   : > { %v821_v20 = vmax.f32 %v816_v18, 0.0  ;;  %v1750_v21 = vpop.f32.mrb[3].mxu1 }
 0x223   : > { %v822_v22 = vpack.c.bf16 %v821_v20, %v820_v19 }
 0x225   : > { %1754 = vmatmul.mubr.msk.bf16.vlgmr.msra.gmra.mrb[4].mxu1 %vm670_vm2, %v822_v22 }
 0x226   : > { %1765 = vmatprep.mubr.msk.bf16.mxu1 %vm2101_vm1, %v2100_v3  ;;  %1764 = vmatpush3.bf16.msra.mxu1 %v1903_v23 }
 0x227   : > { %1775 = vmatprep.subr.bf16.mxu1 %v2100_v3 }
 0x22d   : > { %1766 = vmatmul.mubr.msk.bf16.vlgmr.msra.gmra.mrb[8].mxu1 %vm670_vm2, %v659_v6 }
 0x22e   : > { %1777 = vmatprep.mubr.msk.bf16.mxu1 %vm2101_vm1, %v2100_v3  ;;  %1776 = vmatpush3.bf16.msra.mxu1 %v1098_v63 }
 0x2f8   : > { %v868_v24 = vpop.f32.mrb[4].mxu1 }
 0x2f9   : > { %v1755_v25 = vpop.f32.mrb[5].mxu1 }
 0x2fa   : > { %v871_v26 = vpop.f32.mrb[6].mxu1 }
 0x2fb   : > { %v875_v27 = vpack.c.bf16 %v871_v26, %v868_v24  ;;  %v1756_v28 = vpop.f32.mrb[7].mxu1 }
 0x2fd   : > { %1758 = vmatpush3.bf16.msra.mxu0 %v875_v27  ;;  %v1678_v27 = vld [vmem:[%s2600_s12] ss:$0 sm:$0xff] }
 0x2fe   : > { %1769 = vmatprep.subr.bf16.mxu0 %v2100_v3 }
 0x300   : > { %1760 = vmatmul.mubr.msk.bf16.vlgmr.msra.gmra.mrb[4].mxu0 %vm670_vm2, %v2360_v14  ;;  %v1002_v45 = vpop.f32.mrb[8].mxu1 }
 0x301   : > { %1771 = vmatprep.mubr.msk.bf16.mxu0 %vm2101_vm1, %v2100_v3  ;;  %v1767_v46 = vpop.f32.mrb[9].mxu1  ;;  %v1003_v51 = vadd.f32 %v1675_v48, %v1002_v45  ;;  %1770 = vmatpush3.bf16.msra.mxu0 %v1904_v56  ;;  %v2103_v45 = vmov (!%p1683_p1), 0.0  }
 0x302   : > { %v1005_v49 = vpop.f32.mrb[10].mxu1  ;;  %1781 = vmatprep.subr.bf16.mxu0 (!%p1683_p1), %v2103_v45 }
 0x303   : > { %v1006_v52 = vadd.f32 %v1675_v48, %v1005_v49  ;;  %v1768_v53 = vpop.f32.mrb[11].mxu1  ;;  %v1009_v58 = vmax.f32 %v1003_v51, 0.0 }
 0x305   : > { %v1010_v59 = vmax.f32 %v1006_v52, 0.0 }
 0x307   : > { %v1011_v2 = vpack.c.bf16 %v1010_v59, %v1009_v58 }
 0x309   : > { %1772 = vmatmul.mubr.msk.bf16.vlgmr.msra.gmra.mrb[8].mxu0 %vm670_vm2, %v1011_v2 }
 0x30a   : > { %1783 = vmatprep.mubr.msk.bf16.mxu0 (!%p1683_p1), %vm2104_vm9, %v2103_v45 }
 0x3d3   : > { %v2386_v29 = vpop.f32.mrb[4].mxu0 }
 0x3d4   : > { %v923_v30 = vand.u32 2147483647, %v2386_v29  ;;  %v1761_v31 = vpop.f32.mrb[5].mxu0  ;;  %v917_v1 = vmax.f32 %v2386_v29, 0.0  ;;  %vm919_vm6 = vcmp.ne.f32.partialorder %v2386_v29, %v2386_v29 }
 0x3d5   : > { %v2389_v32 = vpop.f32.mrb[6].mxu0 }
 0x3d6   : > { %v925_v33 = vsub.f32 0.0, %v923_v30  ;;  %v924_v34 = vand.u32 2147483647, %v2389_v32  ;;  %v1762_v35 = vpop.f32.mrb[7].mxu0  ;;  %v918_v9 = vmax.f32 %v2389_v32, 0.0  ;;  %vm920_vm7 = vcmp.ne.f32.partialorder %v2389_v32, %v2389_v32 }
 0x3d8   : > { %v927_v36 = vmul.f32 1.442695, %v925_v33  ;;  %v926_v37 = vsub.f32 0.0, %v924_v34  ;;  %v1681_v33 = vld [vmem:[%s2602_s14] ss:$0 sm:$0xff] }
 0x3da   : > { %1905 = vpow2.f32 %v927_v36  ;;  %v929_v38 = vmul.f32 1.442695, %v926_v37 }
 0x3dc   : > { %1907 = vpow2.f32 %v929_v38  ;;  %v1064_v24 = vpop.f32.mrb[8].mxu0 }
 0x3dd   : > { %v1773_v25 = vpop.f32.mrb[9].mxu0  ;;  %v2415_v30 = vadd.f32 %v1678_v27, %v1064_v24 }
 0x3de   : > { %v1067_v26 = vpop.f32.mrb[10].mxu0 }
 0x3df   : > { %v1774_v28 = vpop.f32.mrb[11].mxu0  ;;  %v2417_v31 = vadd.f32 %v1678_v27, %v1067_v26 }
 0x3e4   : > { %v1906_v39 = vpop.eup %1905 }
 0x3e5   : > { %v931_v40 = vadd.f32 1.0, %v1906_v39  ;;  %v934_v43 = vmul.f32 -0.5, %v1906_v39  ;;  %v937_v50 = vand.u32 2147483647, %v1906_v39 }
 0x3e6   : > { %v1908_v41 = vpop.eup %1907 }
 0x3e7   : > { %1909 = vlog2.f32 %v931_v40  ;;  %v940_v42 = vadd.f32 1.0, %v1908_v41  ;;  %v943_v44 = vmul.f32 -0.5, %v1908_v41  ;;  %v935_v47 = vadd.f32 1.0, %v934_v43  ;;  %v1148_v43 = vld [vmem:[%s2656_s19] sm:$0xff] (!%p1683_p1) }
 0x3e8   : > { %v946_v55 = vand.u32 2147483647, %v1908_v41  ;;  %vm938_vm4 = vcmp.lt.f32.partialorder %v937_v50, 0.0004427343 }
 0x3e9   : > { %1911 = vlog2.f32 %v940_v42  ;;  %v944_v54 = vadd.f32 1.0, %v943_v44  ;;  %v936_v62 = vmul.f32 %v1906_v39, %v935_v47  ;;  %v1149_v44 = vld [vmem:[%s2656_s19 + $0x8] sm:$0xff] (!%p1683_p1) }
 0x3ea   : > { %vm947_vm5 = vcmp.lt.f32.partialorder %v946_v55, 0.0004427343 }
 0x3eb   : > { %v945_v6 = vmul.f32 %v1908_v41, %v944_v54 }
 0x3f1   : > { %v1910_v57 = vpop.eup %1909 }
 0x3f2   : > { %v933_v61 = vmul.f32 0.6931472, %v1910_v57 }
 0x3f3   : > { %v1912_v0 = vpop.eup %1911 }
 0x3f4   : > { %v939_v4 = vsel %vm938_vm4, %v936_v62, %v933_v61  ;;  %v942_v5 = vmul.f32 0.6931472, %v1912_v0 }
 0x3f5   : > { %v949_v7 = vadd.f32 %v939_v4, %v917_v1 }
 0x3f6   : > { %v948_v10 = vsel %vm947_vm5, %v945_v6, %v942_v5 }
 0x3f7   : > { %v951_v11 = vsel %vm919_vm6, %v2386_v29, %v949_v7  ;;  %v950_v12 = vadd.f32 %v948_v10, %v918_v9 }
 0x3f8   : > { %1073 = vrot.lane.b32.xlu0 %v951_v11, %s2102_s28 }
 0x3f9   : > { %v952_v13 = vsel %vm920_vm7, %v2389_v32, %v950_v12 }
 0x3fc   : > { %1075 = vrot.lane.b32.xlu0 %v952_v13, %s2102_s28 }
 0x46a   : > { %v1074_v16 = vpop.permute.xlu0 %1073 }
 0x46b   : > { %v1079_v18 = vmul.f32 %v1074_v16, %v655_v15 }
 0x46d   : > { %v1081_v21 = vadd.f32 %v1079_v18, %v2386_v29 }
 0x46e   : > { %v1076_v19 = vpop.permute.xlu0 %1075 }
 0x46f   : > { %v1080_v20 = vmul.f32 %v1076_v19, %v656_v17  ;;  %v1150_v46 = vmul.f32 (!%p1683_p1), %v1148_v43, %v1081_v21 }
 0x471   : > { %v1082_v22 = vadd.f32 %v1080_v20, %v2389_v32 }
 0x473   : > { %v1083_v23 = vpack.c.bf16 %v1082_v22, %v1081_v21  ;;  %v1151_v47 = vmul.f32 (!%p1683_p1), %v1149_v44, %v1082_v22 }
 0x475   : > { %1778 = vmatmul.mubr.msk.bf16.vlgmr.msra.gmra.mrb[12].mxu1 %vm1092_vm8, %v1083_v23  ;;  %v1152_v48 = vpack.c.bf16 (!%p1683_p1), %v1151_v47, %v1150_v46 }
 0x477   : > { %v1154_v49 = vsel (!%p1683_p1), %vm1092_vm8, %v1152_v48, 0 }
 0x478   : > { %1782 = vmatpush3.bf16.xpose.msra.mxu0 (!%p1683_p1), %v1154_v49 }
 0x47f   : > { %1784 = vmatmul.mubr.msk.bf16.vlgmr.msra.gmra.mrb[0].mxu0 (!%p1683_p1), %vm1092_vm8, %v1152_v48 }
 0x548   : > { %v1134_v34 = vpop.f32.mrb[12].mxu1 }
 0x549   : > { %v1135_v35 = vadd.f32 %v1681_v33, %v1134_v34  ;;  %v1779_v36 = vpop.f32.mrb[13].mxu1  ;;  %1147 = sbr.rel (%p1683_p1) target bundleno = 1366 (0x556), region = 96 }
 0x54a   : > { %v1137_v37 = vpop.f32.mrb[14].mxu1 }
 0x54b   : > { %v1138_v38 = vadd.f32 %v1681_v33, %v1137_v37  ;;  %v1780_v39 = vpop.f32.mrb[15].mxu1  ;;  %v1141_v40 = vmax.f32 %v1135_v35, 0.0 }
 0x54d   : > { %v1142_v41 = vmax.f32 %v1138_v38, 0.0 }
 0x54f   : > { %v1143_v42 = vpack.c.bf16 %v1142_v41, %v1141_v40 }
 0x552   : > { %v1190_v50 = vpop.f32.mrb[0].mxu0 }
 0x553   : > { %1197 = vst.msk [vmem:[#allocation9] sm:$0xff] %vm670_vm2, %v1190_v50  ;;  %v1785_v51 = vpop.f32.mrb[1].mxu0 }
 0x554   : > { %v1193_v52 = vpop.f32.mrb[2].mxu0 }
 0x555   : > { %1198 = vst.msk [vmem:[#allocation9 + $0x8] sm:$0xff] %vm670_vm2, %v1193_v52  ;;  %v1786_v53 = vpop.f32.mrb[3].mxu0 }
 0x556 PF: > { %1793 = vmatprep.subr.bf16.mxu0 %v2100_v3  ;;  %v1913_v54 = vld [vmem:[%s2603_s15] sm:$0xff]   ;;  %1795 = vmatprep.mubr.msk.bf16.mxu0 %vm2101_vm1, %v2100_v3  ;;  %v1915_v56 = vld [vmem:[%s2603_s15 + $0x8] sm:$0xff]   ;;  %s2105_s25 = smov 16   ;;  %s2106_s23 = smov 32  }
 0x557   : > { %1787 = vmatprep.subr.bf16.mxu1 %v2100_v3  ;;  %v1914_v55 = vld [vmem:[%s2604_s16] sm:$0xff]   ;;  %1789 = vmatprep.mubr.msk.bf16.mxu1 %vm2101_vm1, %v2100_v3  ;;  %v1200_v58 = vld [vmem:[#allocation11 + $0x8] sm:$0xff]  ;;  %s2107_s28 = smov 80   ;;  %s2108_s21 = smov 96  }
 0x558   : > { %1794 = vmatpush3.bf16.msra.mxu0 %v1913_v54  ;;  %1788 = vmatpush3.bf16.msra.mxu1 %v1915_v56  ;;  %v1199_v57 = vld [vmem:[#allocation11] sm:$0xff]  ;;  %s2109_s26 = smov [#allocation9]   ;;  %p2657_p4 = scmp.eq.s32.totalorder %s2239_s4, 2 }
 0x559   : > { %1799 = vmatprep.subr.bf16.mxu0 %v2100_v3  ;;  %1805 = vmatprep.subr.bf16.mxu1 %v2100_v3  ;;  %v1203_v59 = vpack.c.bf16 %v1200_v58, %v1199_v57  ;;  %v1202_v60 = vld [vmem:[#allocation2 + $0x8] sm:$0xff]  ;;  %v1201_v13 = vld [vmem:[#allocation2] sm:$0xff]  ;;  %s1519_s24 = sshll.u32 %s2109_s26, 4  ;;  %s1520_s24 = int_to_ptr.vmem [resolvable:$true] %s1519_s24 }
 0x55a   : > { %1417 = vrot.lane.b32.xlu1 %v1199_v57, %s2105_s25  ;;  %1916 = vtanh.f32 %v1202_v60  ;;  %s1972_s10 = scalar_lea.vmem %s1520_s24, 256  ;;  %p1979_p12 = scmp.lt.s32.totalorder %s1520_s24, %s1520_s24 }
 0x55b   : > { %1796 = vmatmul.mubr.msk.bf16.vlgmr.msra.gmra.mrb[0].mxu0 %vm670_vm2, %v2353_v8  ;;  %1790 = vmatmul.mubr.msk.bf16.vlgmr.msra.gmra.mrb[0].mxu1 %vm670_vm2, %v1143_v42  ;;  %p1973_p2 = scmp.ne.s32.totalorder %s1520_s24, %s1972_s10  ;;  %p1980_p13 = scmp.lt.s32.totalorder %s1972_s10, %s1972_s10 }
 0x55c   : > { %1800 = vmatpush3.bf16.msra.mxu0 %v1914_v55  ;;  %1801 = vmatprep.mubr.msk.bf16.mxu0 %vm2101_vm1, %v2100_v3 }
 0x55d   : > { %1807 = vmatprep.mubr.msk.bf16.mxu1 %vm2101_vm1, %v2100_v3  ;;  %p1974_p6 = pnand %p1973_p2, %p2657_p4  ;;  %p1981_p3 = por %p1980_p13, %p1979_p12 }
 0x55e   : > { %1419 = vrot.lane.b32.xlu1 %v1200_v58, %s2105_s25 }
 0x55f   : > { %p1975_p9 = pneg %p1974_p6 }
 0x561   : > { %p1982_p5 = pnand %p1981_p3, %p1975_p9 }
 0x564   : > { %v1917_v8 = vpop.eup %1916 }
 0x565   : > { %1451 = vrot.lane.b32.xlu1 %v1917_v8, %s2106_s23 }
 0x567   : > { %1802 = vmatmul.mubr.msk.bf16.vlgmr.msra.gmra.mrb[0].mxu0 %vm670_vm2, %v1203_v59 }
 0x5cc   : > { %v1418_v23 = vpop.permute.xlu1 %1417 }
 0x5d0   : > { %v1420_v28 = vpop.permute.xlu1 %1419 }
 0x5d7   : > { %v1452_v37 = vpop.permute.xlu1 %1451 }
 0x62e   : > { %v1251_v61 = vpop.f32.mrb[0].mxu1 }
 0x62f   : > { %v1791_v62 = vpop.f32.mrb[1].mxu1 }
 0x630   : > { %v1254_v63 = vpop.f32.mrb[2].mxu1 }
 0x631   : > { %v1792_v0 = vpop.f32.mrb[3].mxu1 }
 0x63a   : > { %v1350_v3 = vpop.f32.mrb[0].mxu0 }
 0x63b   : > { %v1815_v1 = vadd.f32 %v1350_v3, %v1251_v61  ;;  %v1803_v2 = vpop.f32.mrb[1].mxu0 }
 0x63c   : > { %v1353_v4 = vpop.f32.mrb[2].mxu0 }
 0x63d   : > { %v1816_v5 = vadd.f32 %v1353_v4, %v1254_v63  ;;  %v1804_v6 = vpop.f32.mrb[3].mxu0 }
 0x63f   : > { %v1359_v7 = vpack.c.bf16 %v1816_v5, %v1815_v1 }
 0x641   : > { %1806 = vmatpush3.bf16.msra.mxu1 %v1359_v7 }
 0x644   : > { %1808 = vmatmul.mubr.msk.bf16.vlgmr.msra.gmra.mrb[4].mxu1 %vm670_vm2, %v2360_v14 }
 0x717   : > { %v1394_v9 = vpop.f32.mrb[4].mxu1 }
 0x718   : > { %1918 = vtanh.f32 %v1394_v9  ;;  %v1809_v10 = vpop.f32.mrb[5].mxu1  ;;  %v1692_v18 = vmul.f32 -1.442695, %v1394_v9 }
 0x719   : > { %v1397_v11 = vpop.f32.mrb[6].mxu1 }
 0x71a   : > { %v1810_v12 = vpop.f32.mrb[7].mxu1  ;;  %1920 = vtanh.f32 %v1397_v11  ;;  %v1693_v19 = vmul.f32 -1.442695, %v1397_v11 }
 0x71b   : > { %1922 = vtanh.f32 %v1201_v13 }
 0x71c   : > { %1924 = vpow2.f32 %v1692_v18 }
 0x71d   : > { %1926 = vpow2.f32 %v1693_v19 }
 0x722   : > { %v1919_v15 = vpop.eup %1918 }
 0x723   : > { %1427 = vrot.lane.b32.xlu0 %v1919_v15, %s2107_s28 }
 0x724   : > { %v1921_v16 = vpop.eup %1920 }
 0x725   : > { %v1923_v17 = vpop.eup %1922 }
 0x726   : > { %v1925_v14 = vpop.eup %1924 }
 0x727   : > { %1429 = vrot.lane.b32.xlu0 %v1921_v16, %s2107_s28  ;;  %v1407_v20 = vadd.f32 1.0, %v1925_v14  ;;  %v1927_v21 = vpop.eup %1926 }
 0x728   : > { %v1408_v22 = vadd.f32 1.0, %v1927_v21 }
 0x729   : > { %1928 = vrcp.f32 %v1407_v20 }
 0x72a   : > { %1930 = vrcp.f32 %v1408_v22 }
 0x72b   : > { %1449 = vrot.lane.b32.xlu0 %v1923_v17, %s2106_s23 }
 0x733   : > { %v1929_v24 = vpop.eup %1928 }
 0x734   : > { %v1931_v27 = vpop.eup %1930 }
 0x735   : > { %v1456_v38 = vmul.f32 %v1931_v27, %v1452_v37 }
 0x795   : > { %v1428_v25 = vpop.permute.xlu0 %1427 }
 0x796   : > { %v1433_v26 = vmul.f32 %v1929_v24, %v1428_v25 }
 0x798   : > { %1437 = vrot.lane.b32.xlu0 %v1433_v26, %s2105_s25 }
 0x799   : > { %v1430_v33 = vpop.permute.xlu0 %1429 }
 0x79a   : > { %v1434_v34 = vmul.f32 %v1931_v27, %v1430_v33 }
 0x79c   : > { %1479 = vrot.lane.b32.xlu0 %v2415_v30, %s2105_s25  ;;  %1439 = vrot.lane.b32.xlu1 %v1434_v34, %s2105_s25 }
 0x79d   : > { %v1450_v35 = vpop.permute.xlu0 %1449 }
 0x79e   : > { %v1455_v36 = vmul.f32 %v1929_v24, %v1450_v35 }
 0x7a0   : > { %1459 = vrot.lane.b32.xlu0 %v1455_v36, %s2108_s21  ;;  %1481 = vrot.lane.b32.xlu1 %v2417_v31, %s2105_s25 }
 0x7a4   : > { %1461 = vrot.lane.b32.xlu1 %v1456_v38, %s2108_s21 }
 0x7a5   : > { %1985 = shalt.err (!%p1982_p5)
}
 0x7a6   : > { %s2658_s2 = sld [smem:[#allocation31_spill]]  ;;  %p2660_p7 = pmov %p2657_p4 }
 0x7ac   : > { %s2659_s29 = smov %s2658_s2  ;;  %s1986_s0 = scalar_lea.hbm %s2658_s2, 256 }
 0x7ad   : > { %p1987_p8 = scmp.ne.s32.totalorder %s2659_s29, %s1986_s0  ;;  %p1992_p0 = scmp.lt.u32.totalorder %s1986_s0, %s2659_s29 }
 0x7af   : > { %p1988_p10 = pnand %p1987_p8, %p2660_p7 }
 0x7b1   : > { %p1989_p11 = pneg %p1988_p10 }
 0x7b3   : > { %p1994_p1 = pnand %p1992_p0, %p1989_p11 }
 0x7b5   : > { %1997 = shalt.err (!%p1994_p1)
}
 0x7b6   : > { %s2110_s20 = smov 128   ;;  %s2111_s25 = smov 8   ;;  %v1423_v30 = vmul.f32 %v1929_v24, %v1418_v23  ;;  %v1424_v40 = vmul.f32 %v1931_v27, %v1420_v28  ;;  %vm1487_vm10 = vcmask 195584  }
 0x7b7   : > { %p2661_p2 = pmov %p2657_p4  ;;  %s2112_s21 = smov 112  }
 0x7b8   : > { %s1706_s26 = sshll.u32 %s2239_s4, 8  ;;  %s2662_s10 = sld [smem:[#allocation17_spill]] }
 0x7b9   : > { %1827 = dma.vmem_to_hbm [thread:$0]  (%p2661_p2), %s1520_s24, 256, %s2659_s29, [#allocation10], %s2110_s20, %s2110_s20, %s2111_s25  }
 0x7ba   : > { %s1506_s22 = sshll.u32 %s2325_s18, 4  ;;  %s2663_s24 = sld [smem:[#allocation22_spill]]  ;;  %s2503_s22 = int_to_ptr.vmem [resolvable:$true] %s1506_s22 }
 0x7bb   : > { %s2113_s17 = smov [#allocation11]   ;;  %s2664_s3 = sld [smem:[#allocation30_spill]] }
 0x7bc   : > { %s1532_s2 = sshll.u32 %s2113_s17, 4  ;;  %s1998_s28 = scalar_lea.vmem %s2503_s22, 256  ;;  %s2507_s2 = int_to_ptr.vmem [resolvable:$true] %s1532_s2 }
 0x7bd   : > { %p1999_p4 = scmp.ne.s32.totalorder %s2503_s22, %s1998_s28 }
 0x7be   : > { %s2665_s27 = sand.u32 1, %s2662_s10  }
 0x7bf   : > { %s2511_s23 = scalar_lea.sflag [#allocation7], %s2665_s27 }
 0x7c0   : > { %p2666_p6 = scmp.ne.s32.totalorder %s2663_s24, 0 }
 0x7c1   : > { %s2501_s30 = scalar_lea.hbm %s2664_s3, %s1706_s26 }
 0x7c2   : > { %p2000_p9 = pnand %p1999_p4, %p2666_p6 }
 0x7c4   : > { %p2001_p12 = pneg %p2000_p9 }
 0x80a   : > { %v1438_v31 = vpop.permute.xlu0 %1437 }
 0x80b   : > { %v1443_v39 = vadd.f32 %v1438_v31, %v1423_v30 }
 0x80d   : > { %1469 = vrot.lane.b32.xlu0 %v1443_v39, %s2112_s21 }
 0x80e   : > { %v1480_v41 = vpop.permute.xlu0 %1479  ;;  %v1440_v42 = vpop.permute.xlu1 %1439 }
 0x80f   : > { %v1485_v43 = vsel %vm670_vm2, %v2386_v29, %v1480_v41  ;;  %v1444_v44 = vadd.f32 %v1440_v42, %v1424_v40 }
 0x810   : > { %v1488_v45 = vsel %vm1487_vm10, %v1485_v43, 0.0 }
 0x811   : > { %1490 = vst [vmem:[%s2325_s18] sm:$0xff] %v1488_v45  ;;  %1471 = vrot.lane.b32.xlu1 %v1444_v44, %s2112_s21  ;;  %s2114_s21 = smov [#allocation8]  }
 0x812   : > { %v1460_v46 = vpop.permute.xlu0 %1459  ;;  %v1482_v47 = vpop.permute.xlu1 %1481  ;;  %s2002_s26 = sshll.u32 %s2114_s21, 4  ;;  %s2003_s26 = int_to_ptr.vmem [resolvable:$false] %s2002_s26 }
 0x813   : > { %1465 = vst.msk [vmem:[#allocation11] sm:$0xff] %vm670_vm2, %v1460_v46  ;;  %v1486_v48 = vsel %vm670_vm2, %v2389_v32, %v1482_v47  ;;  %s2004_s17 = scalar_lea.vmem %s2003_s26, 512  ;;  %p2005_p13 = scmp.lt.s32.totalorder %s2503_s22, %s2003_s26 }
 0x814   : > { %v1489_v29 = vsel %vm1487_vm10, %v1486_v48, 0.0  ;;  %p2006_p3 = scmp.lt.s32.totalorder %s2004_s17, %s1998_s28 }
 0x815   : > { %1491 = vst [vmem:[%s2325_s18 + $0x8] sm:$0xff] %v1489_v29 }
 0x816   : > { %v1462_v49 = vpop.permute.xlu1 %1461  ;;  %p2007_p5 = por %p2006_p3, %p2005_p13 }
 0x818   : > { %p2008_p8 = pnand %p2007_p5, %p2001_p12 }
 0x81a   : > { %2011 = shalt.err (!%p2008_p8)
}
 0x81b   : > { %s2012_s18 = scalar_lea.hbm %s2501_s30, 256  ;;  %s2016_s1 = scalar_lea.hbm %s2664_s3, 768 }
 0x81c   : > { %p2013_p7 = scmp.ne.s32.totalorder %s2501_s30, %s2012_s18  ;;  %p2017_p0 = scmp.lt.u32.totalorder %s2501_s30, %s2664_s3 }
 0x81d   : > { %p2018_p1 = scmp.lt.u32.totalorder %s2016_s1, %s2012_s18  ;;  %p2020_p4 = scmp.lt.u32.totalorder %s2012_s18, %s2501_s30 }
 0x81e   : > { %p2014_p10 = pnand %p2013_p7, %p2666_p6 }
 0x81f   : > { %p2019_p2 = por %p2018_p1, %p2017_p0 }
 0x820   : > { %p2015_p11 = pneg %p2014_p10 }
 0x821   : > { %p2021_p9 = por %p2020_p4, %p2019_p2 }
 0x823   : > { %p2022_p12 = pnand %p2021_p9, %p2015_p11 }
 0x825   : > { %2025 = shalt.err (!%p2022_p12)
}
 0x826   : > { %1825 = dma.vmem_to_hbm [thread:$0]  (%p2666_p6), %s2503_s22, 256, %s2501_s30, %s2511_s23, %s2110_s20, %s2110_s20, %s2111_s25   ;;  %1466 = vst.msk [vmem:[#allocation11 + $0x8] sm:$0xff] %vm670_vm2, %v1462_v49 }
 0x827   : > { %s2026_s28 = scalar_lea.vmem %s2507_s2, 256  ;;  %p2667_p3 = scmp.eq.s32.totalorder %s2239_s4, 2 }
 0x828   : > { %p2027_p13 = scmp.ne.s32.totalorder %s2507_s2, %s2026_s28  ;;  %p2033_p7 = scmp.lt.s32.totalorder %s2507_s2, %s2507_s2 }
 0x829   : > { %p2034_p10 = scmp.lt.s32.totalorder %s2026_s28, %s2026_s28 }
 0x82a   : > { %p2028_p5 = pnand %p2027_p13, %p2667_p3 }
 0x82b   : > { %p2035_p11 = por %p2034_p10, %p2033_p7 }
 0x82c   : > { %p2029_p8 = pneg %p2028_p5 }
 0x82e   : > { %p2036_p0 = pnand %p2035_p11, %p2029_p8 }
 0x830   : > { %2039 = shalt.err (!%p2036_p0)
}
 0x831   : > { %s2668_s17 = sld [smem:[#allocation32_spill]]  ;;  %p2669_p1 = pmov %p2667_p3 }
 0x837   : > { %s2040_s18 = scalar_lea.hbm %s2668_s17, 256 }
 0x838   : > { %p2041_p6 = scmp.ne.s32.totalorder %s2668_s17, %s2040_s18  ;;  %p2046_p9 = scmp.lt.u32.totalorder %s2040_s18, %s2668_s17 }
 0x83a   : > { %p2042_p2 = pnand %p2041_p6, %p2669_p1 }
 0x83c   : > { %p2043_p4 = pneg %p2042_p2 }
 0x83e   : > { %p2048_p12 = pnand %p2046_p9, %p2043_p4 }
 0x840   : > { %2051 = shalt.err (!%p2048_p12)
}
 0x841   : > { %p2670_p13 = pmov %p2669_p1  ;;  %p2671_p3 = pmov %p2669_p1 }
 0x843   : > { %1829 = dma.vmem_to_hbm [thread:$0]  (%p2670_p13), %s2507_s2, 256, %s2668_s17, [#allocation10], %s2110_s20, %s2110_s20, %s2111_s25  }
 0x87f   : > { %v1470_v32 = vpop.permute.xlu0 %1469 }
 0x880   : > { %1475 = vst.msk [vmem:[#allocation2] sm:$0xff] %vm670_vm2, %v1470_v32 }
 0x883   : > { %v1472_v50 = vpop.permute.xlu1 %1471 }
 0x884   : > { %1476 = vst.msk [vmem:[#allocation2 + $0x8] sm:$0xff] %vm670_vm2, %v1472_v50 }
 0x885   : > { %2075 = dma.done.wait (%p2671_p3), [#allocation10], 512   ;;  %p2672_p5 = pmov %p2669_p1 }
 0x887   : > { %2077 = vsyncadd (%p2672_p5), [#allocation10], 4294966784 }
 0x888 PF: > { %s2673_s27 = sld [smem:[#allocation19_spill]]  ;;  %s2674_s21 = sld [smem:[#allocation16_spill]] }
 0x889   : > { %s2675_s28 = sld [smem:[#allocation23_spill]] }
 0x88e   : > { %p1849_p8 = scmp.ge.s32.totalorder %s2673_s27, 2  ;;  %s1555_s24 = sand.u32 1, %s2674_s21  }
 0x88f   : > { %p2676_p7 = scmp.ne.s32.totalorder %s2675_s28, 0  ;;  %s1556_s20 = scalar_lea.sflag [#allocation7], %s1555_s24 }
 0x891   : > { %p1840_p10 = pnand %p1849_p8, %p2676_p7 }
 0x893   : > { %2079 = dma.done.wait (!%p1840_p10), %s1556_s20, 256  }
 0x894   : > { %2081 = vsyncadd (!%p1840_p10), %s1556_s20, 4294967040  ;;  %s2677_s24 = sld [smem:[#allocation20_spill]]  ;;  %s2678_s22 = sld [smem:[#allocation17_spill]] }
 0x895   : > { %s2679_s2 = sld [smem:[#allocation18_spill]]  ;;  %s2680_s23 = sld [smem:[#allocation21_spill]] }
 0x89a   : > { %p38_p11 = scmp.ge.s32.totalorder %s2677_s24, 5  }
 0x89c   :  { %40 = sbr.rel (!%p38_p11) target bundleno = 28 (0x1c), region = 154 }
 0x8a3   :  { %1561 = vsyncpa [#allocation6], 1 }
 0x8a4   :  { %1563 = vsyncpa [#allocation6 + $0x1], 1 }
 0x8a5   :  { %1564 = vsyncpa [#allocation7], 1 }
 0x8a6   :  { %1566 = vsyncpa [#allocation7 + $0x1], 1 }
 0x8a7   :  { %1567 = vsyncpa [#allocation10], 1 }

</bundles_post_ra>
